<compile_context>
chip_gen: v7x
topology: tpu7x:2x2x1
jax: 0.10.0
libtpu: 0.0.40
codegen_flags: <defaults>
</compile_context>

<pallas_src>
import functools

import jax
import jax.numpy as jnp
from jax.experimental import pallas as pl
from jax.experimental.pallas import tpu as pltpu

LN_EPS = 1e-5


def _vmem_limit_bytes():
    # ~48 MiB on v7x (64 MiB VMEM/TC), 96 MiB on v5e/v6e (128 MiB VMEM).
    try:
        cap = int(pltpu.get_tpu_info().vmem_capacity_bytes)
    except Exception:
        cap = 128 * 1024 * 1024
    return int(min(cap * 3 // 4, 96 * 1024 * 1024))


def _round_up(a, m):
    return -(-a // m) * m


# ----------------------------------------------------------------------------
# In-kernel helpers
# ----------------------------------------------------------------------------
def _layernorm_f32(x, w, b):
    # Single-pass mean/variance (E[x], E[x^2]); clamp var >= 0 to guard the
    # cancellation case flagged in review (rsqrt(eps) path stays finite).
    mu = jnp.mean(x, axis=-1, keepdims=True)
    ex2 = jnp.mean(x * x, axis=-1, keepdims=True)
    var = jnp.maximum(ex2 - mu * mu, 0.0)
    return (x - mu) * jax.lax.rsqrt(var + LN_EPS) * w + b


# ----------------------------------------------------------------------------
# Kernel 1: fused pair of layer-scaled attention branches + residual add
#   out = x + Attn0(LN0(x)) + Attn1(LN1(x))   (gamma, qk-scale pre-folded)
# ----------------------------------------------------------------------------
def attn_pair_kernel(x_ref,
                     ln0w_ref, ln0b_ref, wqkv0_ref, wproj0_ref, bproj0_ref,
                     ln1w_ref, ln1b_ref, wqkv1_ref, wproj1_ref, bproj1_ref,
                     out_ref, *, num_heads, compute_dtype, approx_recip):
    x = x_ref[0].astype(jnp.float32)                     # (N, C)
    n, c = x.shape
    hd = c // num_heads

    def branch(lnw_ref, lnb_ref, wqkv_ref, wproj_ref, bproj_ref):
        xn = _layernorm_f32(x, lnw_ref[...], lnb_ref[...]).astype(compute_dtype)
        # qkv weight pre-transposed to (C, 3C); attention scale pre-folded into
        # the Q columns host-side.
        qkv = jnp.dot(xn, wqkv_ref[...],
                      preferred_element_type=jnp.float32)          # (N, 3C)

        def heads(t):                                    # (N, C) -> (H, N, hd)
            return t.reshape(n, num_heads, hd).transpose(1, 0, 2).astype(
                compute_dtype)
        # TODO(synk): remove these head relayouts by emitting non-leading-batch
        # dot_generals ('qhd,khd->hqk') once verified via pl.lower_as_mlir that
        # Mosaic does not reinsert the transposes.
        q = heads(qkv[:, 0 * c:1 * c])
        k = heads(qkv[:, 1 * c:2 * c])
        v = heads(qkv[:, 2 * c:3 * c])

        # TODO(synk): for long sequences (N >= ~512, v7x 64 MiB VMEM) switch to
        # query-block tiling with an online softmax instead of materializing the
        # (H, N, N) score tensor, and expose the q-tile as a parallel grid axis.
        s = jnp.einsum('hqd,hkd->hqk', q, k,
                       preferred_element_type=jnp.float32)         # (H, N, N)
        s = s - jnp.max(s, axis=-1, keepdims=True)
        e = jnp.exp(s)
        den = jnp.sum(e, axis=-1, keepdims=True)                   # (H, N, 1)

        # Unnormalized PV matmul; softmax normalization deferred to the much
        # smaller (H, N, hd) tensor (broadcast over head_dim).
        o = jnp.einsum('hqk,hkd->hqd', e.astype(compute_dtype), v,
                       preferred_element_type=jnp.float32)
        o = o * pl.reciprocal(den, approx=approx_recip)
        o = o.transpose(1, 0, 2).reshape(n, c).astype(compute_dtype)
        # gamma pre-folded into wproj / bproj (weights already (C_in, C_out)).
        return (jnp.dot(o, wproj_ref[...], preferred_element_type=jnp.float32)
                + bproj_ref[...])

    y = (x
         + branch(ln0w_ref, ln0b_ref, wqkv0_ref, wproj0_ref, bproj0_ref)
         + branch(ln1w_ref, ln1b_ref, wqkv1_ref, wproj1_ref, bproj1_ref))
    out_ref[0] = y.astype(out_ref.dtype)


# ----------------------------------------------------------------------------
# Kernel 2: fused pair of layer-scaled MLP branches + residual add
#   out = x + Mlp0(LN0(x)) + Mlp1(LN1(x))     (gamma pre-folded into fc2)
# ----------------------------------------------------------------------------
def mlp_pair_kernel(x_ref,
                    ln0w_ref, ln0b_ref, w10_ref, b10_ref, w20_ref, b20_ref,
                    ln1w_ref, ln1b_ref, w11_ref, b11_ref, w21_ref, b21_ref,
                    out_ref, *, compute_dtype):
    x = x_ref[0].astype(jnp.float32)                     # (tn, C)

    def branch(lnw_ref, lnb_ref, w1_ref, b1_ref, w2_ref, b2_ref):
        xn = _layernorm_f32(x, lnw_ref[...], lnb_ref[...]).astype(compute_dtype)
        h = (jnp.dot(xn, w1_ref[...], preferred_element_type=jnp.float32)
             + b1_ref[...])
        h = jax.nn.gelu(h, approximate=False).astype(compute_dtype)  # nn.GELU
        # TODO(synk): if weights must stay f32 on v5e, additionally tile the
        # hidden (K) contraction with a VMEM accumulator.
        return (jnp.dot(h, w2_ref[...], preferred_element_type=jnp.float32)
                + b2_ref[...])

    y = (x
         + branch(ln0w_ref, ln0b_ref, w10_ref, b10_ref, w20_ref, b20_ref)
         + branch(ln1w_ref, ln1b_ref, w11_ref, b11_ref, w21_ref, b21_ref))
    out_ref[0] = y.astype(out_ref.dtype)


# ----------------------------------------------------------------------------
# pallas_call wrappers
# ----------------------------------------------------------------------------
def _weight_spec(a, index_map):
    # Grid-invariant operand: single buffer (no re-DMA across grid steps).
    return pl.BlockSpec(a.shape, index_map, pipeline_mode=pl.Buffered(1))


def attn_pair(x, p0, p1, num_heads, compute_dtype, approx_recip):
    B, N, C = x.shape
    kern = functools.partial(attn_pair_kernel, num_heads=num_heads,
                             compute_dtype=compute_dtype,
                             approx_recip=approx_recip)
    w_args = (p0["ln_w"], p0["ln_b"], p0["w_qkv"], p0["w_proj"], p0["b_proj"],
              p1["ln_w"], p1["ln_b"], p1["w_qkv"], p1["w_proj"], p1["b_proj"])
    in_specs = [pl.BlockSpec((1, N, C), lambda b: (b, 0, 0))] + [
        _weight_spec(a, lambda b, _nd=a.ndim: (0,) * _nd) for a in w_args
    ]
    # TODO(synk): with query-block tiling, add a second parallel grid axis so
    # v7x's two TensorCores split work even when B == 1.
    return pl.pallas_call(
        kern,
        out_shape=jax.ShapeDtypeStruct((B, N, C), x.dtype),
        grid=(B,),
        in_specs=in_specs,
        out_specs=pl.BlockSpec((1, N, C), lambda b: (b, 0, 0)),
        compiler_params=pltpu.CompilerParams(
            dimension_semantics=("parallel",),
            vmem_limit_bytes=_vmem_limit_bytes()),
    )(x, *w_args)


def mlp_pair(x, p0, p1, compute_dtype, token_tile=256):
    B, N, C = x.shape
    # Choose a sublane-aligned token tile and pad N up to a multiple of it
    # (keeps the second parallel grid axis; no silent tn=N fallback for N=197).
    tn = min(token_tile, _round_up(N, 8))
    if N >= 128:
        tn = max(128, (tn // 128) * 128)
    Np = _round_up(N, tn)
    xin = x if Np == N else jnp.pad(x, ((0, 0), (0, Np - N), (0, 0)))

    kern = functools.partial(mlp_pair_kernel, compute_dtype=compute_dtype)
    w_args = (p0["ln_w"], p0["ln_b"], p0["w1"], p0["b1"], p0["w2"], p0["b2"],
              p1["ln_w"], p1["ln_b"], p1["w1"], p1["b1"], p1["w2"], p1["b2"])
    in_specs = [pl.BlockSpec((1, tn, C), lambda b, t: (b, t, 0))] + [
        _weight_spec(a, lambda b, t, _nd=a.ndim: (0,) * _nd) for a in w_args
    ]
    out = pl.pallas_call(
        kern,
        out_shape=jax.ShapeDtypeStruct((B, Np, C), x.dtype),
        grid=(B, Np // tn),
        in_specs=in_specs,
        out_specs=pl.BlockSpec((1, tn, C), lambda b, t: (b, t, 0)),
        compiler_params=pltpu.CompilerParams(
            dimension_semantics=("parallel", "parallel"),
            vmem_limit_bytes=_vmem_limit_bytes()),
    )(xin, *w_args)
    return out if Np == N else out[:, :N, :]


# ----------------------------------------------------------------------------
# Host-side parameter preparation (transpose, scale/gamma folding, dtype cast)
# ----------------------------------------------------------------------------
def prepare_params(params, num_heads, compute_dtype):
    """Transpose PyTorch (out,in) weights to (in,out), fold the attention scale
    into the Q columns of w_qkv, fold gamma into proj/fc2 weights and biases,
    and cast matmul weights to compute_dtype (LN params and biases stay f32).
    Note: with compute_dtype=bf16 the folded gamma/scale are rounded together
    with the weights (reference applies them in f32 after); error stays within
    tolerance because bf16 keeps the f32 exponent range."""
    out = {}
    for name in ("attn", "attn1"):
        p = params[name]
        C = p["w_qkv"].shape[1]
        scale = (C // num_heads) ** -0.5
        gamma = p["gamma"]                                  # (1, C)
        w_qkv_t = p["w_qkv"].T                              # (C, 3C) [q|k|v]
        w_qkv_t = w_qkv_t.at[:, :C].multiply(scale)         # fold q scale
        out[name] = dict(
            ln_w=p["ln_w"].astype(jnp.float32),
            ln_b=p["ln_b"].astype(jnp.float32),
            w_qkv=w_qkv_t.astype(compute_dtype),
            w_proj=(p["w_proj"].T * gamma).astype(compute_dtype),
            b_proj=(p["b_proj"] * gamma).astype(jnp.float32),
        )
    for name in ("mlp", "mlp1"):
        p = params[name]
        gamma = p["gamma"]                                  # (1, C)
        out[name] = dict(
            ln_w=p["ln_w"].astype(jnp.float32),
            ln_b=p["ln_b"].astype(jnp.float32),
            w1=p["w1"].T.astype(compute_dtype),
            b1=p["b1"].astype(jnp.float32),
            w2=(p["w2"].T * gamma).astype(compute_dtype),
            b2=(p["b2"] * gamma).astype(jnp.float32),
        )
    return out


def layer_scale_init_block(x, params, num_heads, compute_dtype=jnp.bfloat16,
                           approx_recip=None, token_tile=256):
    # drop_path == Identity, dropouts == 0.0 in the reference module.
    # NOTE: for real deployments prefer C / hidden as multiples of 128 and
    # head_dim >= 64 (lane-dense stores, better MXU contraction utilization).
    if approx_recip is None:
        approx_recip = (jnp.dtype(compute_dtype) != jnp.dtype(jnp.float32))
    kp = prepare_params(params, num_heads, compute_dtype)
    x = attn_pair(x, kp["attn"], kp["attn1"], num_heads, compute_dtype,
                  approx_recip)
    x = mlp_pair(x, kp["mlp"], kp["mlp1"], compute_dtype, token_tile)
    return x


# ----------------------------------------------------------------------------
# Deterministic parameter init (PyTorch-layout parameter shapes)
# ----------------------------------------------------------------------------
def init_params(key, dim, mlp_ratio=4.0, init_values=1e-4):
    hidden = int(dim * mlp_ratio)

    def lin_w(k, out_f, in_f):
        return jax.random.normal(k, (out_f, in_f), jnp.float32) * 0.02

    keys = jax.random.split(key, 4)
    params = {}
    for i, name in enumerate(["attn", "attn1"]):
        k1, k2 = jax.random.split(keys[i])
        params[name] = dict(
            ln_w=jnp.ones((1, dim), jnp.float32),
            ln_b=jnp.zeros((1, dim), jnp.float32),
            w_qkv=lin_w(k1, 3 * dim, dim),          # qkv_bias=False
            w_proj=lin_w(k2, dim, dim),
            b_proj=jnp.zeros((1, dim), jnp.float32),
            gamma=jnp.full((1, dim), init_values, jnp.float32),
        )
    for i, name in enumerate(["mlp", "mlp1"]):
        k1, k2 = jax.random.split(keys[2 + i])
        params[name] = dict(
            ln_w=jnp.ones((1, dim), jnp.float32),
            ln_b=jnp.zeros((1, dim), jnp.float32),
            w1=lin_w(k1, hidden, dim),
            b1=jnp.zeros((1, hidden), jnp.float32),
            w2=lin_w(k2, dim, hidden),
            b2=jnp.zeros((1, dim), jnp.float32),
            gamma=jnp.full((1, dim), init_values, jnp.float32),
        )
    return params


# ----------------------------------------------------------------------------
# Pure-JAX reference (mirrors the PyTorch forward exactly)
# ----------------------------------------------------------------------------
def _ref_ln(x, w, b):
    mu = jnp.mean(x, axis=-1, keepdims=True)
    var = jnp.mean((x - mu) ** 2, axis=-1, keepdims=True)
    return (x - mu) / jnp.sqrt(var + LN_EPS) * w[0] + b[0]


def _ref_attn(x, p, num_heads):
    B, N, C = x.shape
    hd = C // num_heads
    scale = hd ** -0.5
    xn = _ref_ln(x, p["ln_w"], p["ln_b"])
    qkv = xn @ p["w_qkv"].T
    qkv = qkv.reshape(B, N, 3, num_heads, hd).transpose(2, 0, 3, 1, 4)
    q, k, v = qkv[0] * scale, qkv[1], qkv[2]
    a = jax.nn.softmax(q @ jnp.swapaxes(k, -2, -1), axis=-1)
    o = (a @ v).transpose(0, 2, 1, 3).reshape(B, N, C)
    o = o @ p["w_proj"].T + p["b_proj"][0]
    return p["gamma"][0] * o


def _ref_mlp(x, p):
    xn = _ref_ln(x, p["ln_w"], p["ln_b"])
    h = jax.nn.gelu(xn @ p["w1"].T + p["b1"][0], approximate=False)
    return p["gamma"][0] * (h @ p["w2"].T + p["b2"][0])


def reference_block(x, params, num_heads):
    x = x + _ref_attn(x, params["attn"], num_heads) \
          + _ref_attn(x, params["attn1"], num_heads)
    x = x + _ref_mlp(x, params["mlp"]) + _ref_mlp(x, params["mlp1"])
    return x


# ----------------------------------------------------------------------------
if __name__ == "__main__":
    B, N, C = 2, 8, 32          # batch, tokens, dim
    NUM_HEADS = 4               # head_dim = 8
    key = jax.random.PRNGKey(0)
    kx, kp = jax.random.split(key)
    x = jax.random.normal(kx, (B, N, C), jnp.float32)
    params = init_params(kp, C, mlp_ratio=4.0, init_values=1e-4)

    ref = reference_block(x, params, NUM_HEADS)

    # f32 matmul operands + exact reciprocal: tight correctness check.
    out_f32 = jax.block_until_ready(
        layer_scale_init_block(x, params, NUM_HEADS, compute_dtype=jnp.float32))
    assert out_f32.shape == (B, N, C)
    assert jnp.allclose(out_f32, ref, atol=1e-4, rtol=1e-4), "f32 mismatch"

    # Default path: bf16 matmul operands, f32 accumulation (fast MXU path).
    out_bf16 = jax.block_until_ready(
        layer_scale_init_block(x, params, NUM_HEADS))
    assert jnp.allclose(out_bf16, ref, atol=2e-3, rtol=2e-3), "bf16 mismatch"

    print("KERNEL_OK")
</pallas_src>

<mosaic_0001>
module attributes {stable_mosaic.version = 11 : i64} {
  func.func @attn_pair_kernel(%arg0: i32, %arg1: memref<1x8x32xf32, #tpu.memory_space<vmem>>, %arg2: memref<1x32xf32, #tpu.memory_space<vmem>>, %arg3: memref<1x32xf32, #tpu.memory_space<vmem>>, %arg4: memref<32x96xf32, #tpu.memory_space<vmem>>, %arg5: memref<32x32xf32, #tpu.memory_space<vmem>>, %arg6: memref<1x32xf32, #tpu.memory_space<vmem>>, %arg7: memref<1x32xf32, #tpu.memory_space<vmem>>, %arg8: memref<1x32xf32, #tpu.memory_space<vmem>>, %arg9: memref<32x96xf32, #tpu.memory_space<vmem>>, %arg10: memref<32x32xf32, #tpu.memory_space<vmem>>, %arg11: memref<1x32xf32, #tpu.memory_space<vmem>>, %arg12: memref<1x8x32xf32, #tpu.memory_space<vmem>>) attributes {dimension_semantics = [#tpu.dimension_semantics<parallel>], iteration_bounds = array<i64: 2>, scalar_prefetch = 0 : i64, scratch_operands = 0 : i64, tpu.core_type = #tpu.core_type<tc>, window_params = [{transform_indices = @transform_0, window_bounds = array<i64: 1, 8, 32>}, {pipeline_mode = #tpu.pipeline_mode<synchronous>, transform_indices = @transform_1, window_bounds = array<i64: 1, 32>}, {pipeline_mode = #tpu.pipeline_mode<synchronous>, transform_indices = @transform_2, window_bounds = array<i64: 1, 32>}, {pipeline_mode = #tpu.pipeline_mode<synchronous>, transform_indices = @transform_3, window_bounds = array<i64: 32, 96>}, {pipeline_mode = #tpu.pipeline_mode<synchronous>, transform_indices = @transform_4, window_bounds = array<i64: 32, 32>}, {pipeline_mode = #tpu.pipeline_mode<synchronous>, transform_indices = @transform_5, window_bounds = array<i64: 1, 32>}, {pipeline_mode = #tpu.pipeline_mode<synchronous>, transform_indices = @transform_6, window_bounds = array<i64: 1, 32>}, {pipeline_mode = #tpu.pipeline_mode<synchronous>, transform_indices = @transform_7, window_bounds = array<i64: 1, 32>}, {pipeline_mode = #tpu.pipeline_mode<synchronous>, transform_indices = @transform_8, window_bounds = array<i64: 32, 96>}, {pipeline_mode = #tpu.pipeline_mode<synchronous>, transform_indices = @transform_9, window_bounds = array<i64: 32, 32>}, {pipeline_mode = #tpu.pipeline_mode<synchronous>, transform_indices = @transform_10, window_bounds = array<i64: 1, 32>}, {transform_indices = @transform_11, window_bounds = array<i64: 1, 8, 32>}]} {
    %c0 = arith.constant 0 : index
    %c0_0 = arith.constant 0 : index
    %c0_1 = arith.constant 0 : index
    %0 = vector.load %arg1[%c0, %c0_0, %c0_1] : memref<1x8x32xf32, #tpu.memory_space<vmem>>, vector<1x8x32xf32>
    %1 = vector.shape_cast %0 : vector<1x8x32xf32> to vector<8x32xf32>
    %c0_2 = arith.constant 0 : index
    %c0_3 = arith.constant 0 : index
    %2 = vector.load %arg2[%c0_2, %c0_3] : memref<1x32xf32, #tpu.memory_space<vmem>>, vector<1x32xf32>
    %c0_4 = arith.constant 0 : index
    %c0_5 = arith.constant 0 : index
    %3 = vector.load %arg3[%c0_4, %c0_5] : memref<1x32xf32, #tpu.memory_space<vmem>>, vector<1x32xf32>
    %cst = arith.constant dense<0.000000e+00> : vector<8xf32>
    %4 = vector.multi_reduction <add>, %1, %cst [1] : vector<8x32xf32> to vector<8xf32>
    %5 = vector.shape_cast %4 : vector<8xf32> to vector<8x1xf32>
    %cst_6 = arith.constant 3.200000e+01 : f32
    %6 = vector.broadcast %cst_6 : f32 to vector<8x1xf32>
    %7 = arith.divf %5, %6 : vector<8x1xf32>
    %8 = arith.mulf %1, %1 : vector<8x32xf32>
    %cst_7 = arith.constant dense<0.000000e+00> : vector<8xf32>
    %9 = vector.multi_reduction <add>, %8, %cst_7 [1] : vector<8x32xf32> to vector<8xf32>
    %10 = vector.shape_cast %9 : vector<8xf32> to vector<8x1xf32>
    %cst_8 = arith.constant 3.200000e+01 : f32
    %11 = vector.broadcast %cst_8 : f32 to vector<8x1xf32>
    %12 = arith.divf %10, %11 : vector<8x1xf32>
    %13 = arith.mulf %7, %7 : vector<8x1xf32>
    %14 = arith.subf %12, %13 : vector<8x1xf32>
    %cst_9 = arith.constant 0.000000e+00 : f32
    %15 = vector.broadcast %cst_9 : f32 to vector<8x1xf32>
    %16 = arith.maximumf %14, %15 : vector<8x1xf32>
    %17 = vector.broadcast %7 : vector<8x1xf32> to vector<8x32xf32>
    %18 = arith.subf %1, %17 : vector<8x32xf32>
    %cst_10 = arith.constant 9.99999974E-6 : f32
    %19 = vector.broadcast %cst_10 : f32 to vector<8x1xf32>
    %20 = arith.addf %16, %19 : vector<8x1xf32>
    %21 = math.rsqrt %20 : vector<8x1xf32>
    %22 = vector.broadcast %21 : vector<8x1xf32> to vector<8x32xf32>
    %23 = arith.mulf %18, %22 : vector<8x32xf32>
    %24 = vector.broadcast %2 : vector<1x32xf32> to vector<8x32xf32>
    %25 = arith.mulf %23, %24 : vector<8x32xf32>
    %26 = vector.broadcast %3 : vector<1x32xf32> to vector<8x32xf32>
    %27 = arith.addf %25, %26 : vector<8x32xf32>
    %c0_11 = arith.constant 0 : index
    %c0_12 = arith.constant 0 : index
    %28 = vector.load %arg4[%c0_11, %c0_12] : memref<32x96xf32, #tpu.memory_space<vmem>>, vector<32x96xf32>
    %cst_13 = arith.constant dense<0.000000e+00> : vector<8x96xf32>
    %29 = tpu.matmul %27, %28, %cst_13 {dimension_numbers = #tpu.dot_dimension_numbers<[1], [0], [0], [1], [0, 0, 1, 1], [], []>} : vector<8x32xf32>, vector<32x96xf32>, vector<8x96xf32> -> vector<8x96xf32>
    %30 = vector.extract_strided_slice %29 {offsets = [0, 0], sizes = [8, 32], strides = [1, 1]} : vector<8x96xf32> to vector<8x32xf32>
    %31 = vector.shape_cast %30 : vector<8x32xf32> to vector<8x4x8xf32>
    %32 = tpu.transpose %31, [1, 0, 2] : vector<8x4x8xf32> -> vector<4x8x8xf32>
    %33 = vector.extract_strided_slice %29 {offsets = [0, 32], sizes = [8, 32], strides = [1, 1]} : vector<8x96xf32> to vector<8x32xf32>
    %34 = vector.shape_cast %33 : vector<8x32xf32> to vector<8x4x8xf32>
    %35 = tpu.transpose %34, [1, 0, 2] : vector<8x4x8xf32> -> vector<4x8x8xf32>
    %36 = vector.extract_strided_slice %29 {offsets = [0, 64], sizes = [8, 32], strides = [1, 1]} : vector<8x96xf32> to vector<8x32xf32>
    %37 = vector.shape_cast %36 : vector<8x32xf32> to vector<8x4x8xf32>
    %38 = tpu.transpose %37, [1, 0, 2] : vector<8x4x8xf32> -> vector<4x8x8xf32>
    "tpu.trace_start"() <{level = 10 : i32, message = "hqd,hkd->hqk"}> : () -> ()
    %cst_14 = arith.constant dense<0.000000e+00> : vector<4x8x8xf32>
    %39 = tpu.matmul %32, %35, %cst_14 {dimension_numbers = #tpu.dot_dimension_numbers<[2], [2], [1], [1], [0, 0, 0, 1, 1, 1], [0], [0]>} : vector<4x8x8xf32>, vector<4x8x8xf32>, vector<4x8x8xf32> -> vector<4x8x8xf32>
    "tpu.trace_stop"() : () -> ()
    %cst_15 = arith.constant dense<0xFF800000> : vector<4x8xf32>
    %40 = vector.multi_reduction <maximumf>, %39, %cst_15 [2] : vector<4x8x8xf32> to vector<4x8xf32>
    %41 = vector.shape_cast %40 : vector<4x8xf32> to vector<4x8x1xf32>
    %42 = vector.broadcast %41 : vector<4x8x1xf32> to vector<4x8x8xf32>
    %43 = arith.subf %39, %42 : vector<4x8x8xf32>
    %44 = math.exp %43 : vector<4x8x8xf32>
    %cst_16 = arith.constant dense<0.000000e+00> : vector<4x8xf32>
    %45 = vector.multi_reduction <add>, %44, %cst_16 [2] : vector<4x8x8xf32> to vector<4x8xf32>
    %46 = vector.shape_cast %45 : vector<4x8xf32> to vector<4x8x1xf32>
    "tpu.trace_start"() <{level = 10 : i32, message = "hqk,hkd->hqd"}> : () -> ()
    %cst_17 = arith.constant dense<0.000000e+00> : vector<4x8x8xf32>
    %47 = tpu.matmul %44, %38, %cst_17 {dimension_numbers = #tpu.dot_dimension_numbers<[2], [1], [1], [2], [0, 0, 0, 1, 1, 2], [0], [0]>} : vector<4x8x8xf32>, vector<4x8x8xf32>, vector<4x8x8xf32> -> vector<4x8x8xf32>
    "tpu.trace_stop"() : () -> ()
    %48 = tpu.reciprocal %46 : vector<4x8x1xf32> -> vector<4x8x1xf32>
    %49 = vector.broadcast %48 : vector<4x8x1xf32> to vector<4x8x8xf32>
    %50 = arith.mulf %47, %49 : vector<4x8x8xf32>
    %51 = tpu.transpose %50, [1, 0, 2] : vector<4x8x8xf32> -> vector<8x4x8xf32>
    %52 = vector.shape_cast %51 : vector<8x4x8xf32> to vector<8x32xf32>
    %c0_18 = arith.constant 0 : index
    %c0_19 = arith.constant 0 : index
    %53 = vector.load %arg5[%c0_18, %c0_19] : memref<32x32xf32, #tpu.memory_space<vmem>>, vector<32x32xf32>
    %cst_20 = arith.constant dense<0.000000e+00> : vector<8x32xf32>
    %54 = tpu.matmul %52, %53, %cst_20 {dimension_numbers = #tpu.dot_dimension_numbers<[1], [0], [0], [1], [0, 0, 1, 1], [], []>} : vector<8x32xf32>, vector<32x32xf32>, vector<8x32xf32> -> vector<8x32xf32>
    %c0_21 = arith.constant 0 : index
    %c0_22 = arith.constant 0 : index
    %55 = vector.load %arg6[%c0_21, %c0_22] : memref<1x32xf32, #tpu.memory_space<vmem>>, vector<1x32xf32>
    %56 = vector.broadcast %55 : vector<1x32xf32> to vector<8x32xf32>
    %57 = arith.addf %54, %56 : vector<8x32xf32>
    %58 = arith.addf %1, %57 : vector<8x32xf32>
    %c0_23 = arith.constant 0 : index
    %c0_24 = arith.constant 0 : index
    %59 = vector.load %arg7[%c0_23, %c0_24] : memref<1x32xf32, #tpu.memory_space<vmem>>, vector<1x32xf32>
    %c0_25 = arith.constant 0 : index
    %c0_26 = arith.constant 0 : index
    %60 = vector.load %arg8[%c0_25, %c0_26] : memref<1x32xf32, #tpu.memory_space<vmem>>, vector<1x32xf32>
    %cst_27 = arith.constant dense<0.000000e+00> : vector<8xf32>
    %61 = vector.multi_reduction <add>, %1, %cst_27 [1] : vector<8x32xf32> to vector<8xf32>
    %62 = vector.shape_cast %61 : vector<8xf32> to vector<8x1xf32>
    %cst_28 = arith.constant 3.200000e+01 : f32
    %63 = vector.broadcast %cst_28 : f32 to vector<8x1xf32>
    %64 = arith.divf %62, %63 : vector<8x1xf32>
    %65 = arith.mulf %1, %1 : vector<8x32xf32>
    %cst_29 = arith.constant dense<0.000000e+00> : vector<8xf32>
    %66 = vector.multi_reduction <add>, %65, %cst_29 [1] : vector<8x32xf32> to vector<8xf32>
    %67 = vector.shape_cast %66 : vector<8xf32> to vector<8x1xf32>
    %cst_30 = arith.constant 3.200000e+01 : f32
    %68 = vector.broadcast %cst_30 : f32 to vector<8x1xf32>
    %69 = arith.divf %67, %68 : vector<8x1xf32>
    %70 = arith.mulf %64, %64 : vector<8x1xf32>
    %71 = arith.subf %69, %70 : vector<8x1xf32>
    %cst_31 = arith.constant 0.000000e+00 : f32
    %72 = vector.broadcast %cst_31 : f32 to vector<8x1xf32>
    %73 = arith.maximumf %71, %72 : vector<8x1xf32>
    %74 = vector.broadcast %64 : vector<8x1xf32> to vector<8x32xf32>
    %75 = arith.subf %1, %74 : vector<8x32xf32>
    %cst_32 = arith.constant 9.99999974E-6 : f32
    %76 = vector.broadcast %cst_32 : f32 to vector<8x1xf32>
    %77 = arith.addf %73, %76 : vector<8x1xf32>
    %78 = math.rsqrt %77 : vector<8x1xf32>
    %79 = vector.broadcast %78 : vector<8x1xf32> to vector<8x32xf32>
    %80 = arith.mulf %75, %79 : vector<8x32xf32>
    %81 = vector.broadcast %59 : vector<1x32xf32> to vector<8x32xf32>
    %82 = arith.mulf %80, %81 : vector<8x32xf32>
    %83 = vector.broadcast %60 : vector<1x32xf32> to vector<8x32xf32>
    %84 = arith.addf %82, %83 : vector<8x32xf32>
    %c0_33 = arith.constant 0 : index
    %c0_34 = arith.constant 0 : index
    %85 = vector.load %arg9[%c0_33, %c0_34] : memref<32x96xf32, #tpu.memory_space<vmem>>, vector<32x96xf32>
    %cst_35 = arith.constant dense<0.000000e+00> : vector<8x96xf32>
    %86 = tpu.matmul %84, %85, %cst_35 {dimension_numbers = #tpu.dot_dimension_numbers<[1], [0], [0], [1], [0, 0, 1, 1], [], []>} : vector<8x32xf32>, vector<32x96xf32>, vector<8x96xf32> -> vector<8x96xf32>
    %87 = vector.extract_strided_slice %86 {offsets = [0, 0], sizes = [8, 32], strides = [1, 1]} : vector<8x96xf32> to vector<8x32xf32>
    %88 = vector.shape_cast %87 : vector<8x32xf32> to vector<8x4x8xf32>
    %89 = tpu.transpose %88, [1, 0, 2] : vector<8x4x8xf32> -> vector<4x8x8xf32>
    %90 = vector.extract_strided_slice %86 {offsets = [0, 32], sizes = [8, 32], strides = [1, 1]} : vector<8x96xf32> to vector<8x32xf32>
    %91 = vector.shape_cast %90 : vector<8x32xf32> to vector<8x4x8xf32>
    %92 = tpu.transpose %91, [1, 0, 2] : vector<8x4x8xf32> -> vector<4x8x8xf32>
    %93 = vector.extract_strided_slice %86 {offsets = [0, 64], sizes = [8, 32], strides = [1, 1]} : vector<8x96xf32> to vector<8x32xf32>
    %94 = vector.shape_cast %93 : vector<8x32xf32> to vector<8x4x8xf32>
    %95 = tpu.transpose %94, [1, 0, 2] : vector<8x4x8xf32> -> vector<4x8x8xf32>
    "tpu.trace_start"() <{level = 10 : i32, message = "hqd,hkd->hqk"}> : () -> ()
    %cst_36 = arith.constant dense<0.000000e+00> : vector<4x8x8xf32>
    %96 = tpu.matmul %89, %92, %cst_36 {dimension_numbers = #tpu.dot_dimension_numbers<[2], [2], [1], [1], [0, 0, 0, 1, 1, 1], [0], [0]>} : vector<4x8x8xf32>, vector<4x8x8xf32>, vector<4x8x8xf32> -> vector<4x8x8xf32>
    "tpu.trace_stop"() : () -> ()
    %cst_37 = arith.constant dense<0xFF800000> : vector<4x8xf32>
    %97 = vector.multi_reduction <maximumf>, %96, %cst_37 [2] : vector<4x8x8xf32> to vector<4x8xf32>
    %98 = vector.shape_cast %97 : vector<4x8xf32> to vector<4x8x1xf32>
    %99 = vector.broadcast %98 : vector<4x8x1xf32> to vector<4x8x8xf32>
    %100 = arith.subf %96, %99 : vector<4x8x8xf32>
    %101 = math.exp %100 : vector<4x8x8xf32>
    %cst_38 = arith.constant dense<0.000000e+00> : vector<4x8xf32>
    %102 = vector.multi_reduction <add>, %101, %cst_38 [2] : vector<4x8x8xf32> to vector<4x8xf32>
    %103 = vector.shape_cast %102 : vector<4x8xf32> to vector<4x8x1xf32>
    "tpu.trace_start"() <{level = 10 : i32, message = "hqk,hkd->hqd"}> : () -> ()
    %cst_39 = arith.constant dense<0.000000e+00> : vector<4x8x8xf32>
    %104 = tpu.matmul %101, %95, %cst_39 {dimension_numbers = #tpu.dot_dimension_numbers<[2], [1], [1], [2], [0, 0, 0, 1, 1, 2], [0], [0]>} : vector<4x8x8xf32>, vector<4x8x8xf32>, vector<4x8x8xf32> -> vector<4x8x8xf32>
    "tpu.trace_stop"() : () -> ()
    %105 = tpu.reciprocal %103 : vector<4x8x1xf32> -> vector<4x8x1xf32>
    %106 = vector.broadcast %105 : vector<4x8x1xf32> to vector<4x8x8xf32>
    %107 = arith.mulf %104, %106 : vector<4x8x8xf32>
    %108 = tpu.transpose %107, [1, 0, 2] : vector<4x8x8xf32> -> vector<8x4x8xf32>
    %109 = vector.shape_cast %108 : vector<8x4x8xf32> to vector<8x32xf32>
    %c0_40 = arith.constant 0 : index
    %c0_41 = arith.constant 0 : index
    %110 = vector.load %arg10[%c0_40, %c0_41] : memref<32x32xf32, #tpu.memory_space<vmem>>, vector<32x32xf32>
    %cst_42 = arith.constant dense<0.000000e+00> : vector<8x32xf32>
    %111 = tpu.matmul %109, %110, %cst_42 {dimension_numbers = #tpu.dot_dimension_numbers<[1], [0], [0], [1], [0, 0, 1, 1], [], []>} : vector<8x32xf32>, vector<32x32xf32>, vector<8x32xf32> -> vector<8x32xf32>
    %c0_43 = arith.constant 0 : index
    %c0_44 = arith.constant 0 : index
    %112 = vector.load %arg11[%c0_43, %c0_44] : memref<1x32xf32, #tpu.memory_space<vmem>>, vector<1x32xf32>
    %113 = vector.broadcast %112 : vector<1x32xf32> to vector<8x32xf32>
    %114 = arith.addf %111, %113 : vector<8x32xf32>
    %115 = arith.addf %58, %114 : vector<8x32xf32>
    %c0_45 = arith.constant 0 : index
    %c0_46 = arith.constant 0 : index
    %c0_47 = arith.constant 0 : index
    %116 = vector.load %arg12[%c0_45, %c0_46, %c0_47] : memref<1x8x32xf32, #tpu.memory_space<vmem>>, vector<1x8x32xf32>
    %117 = vector.shape_cast %116 : vector<1x8x32xf32> to vector<8x32xf32>
    %118 = vector.shape_cast %115 : vector<8x32xf32> to vector<1x8x32xf32>
    tpu.vector_store %arg12[%c0_45, %c0_46, %c0_47], %118 {strides = array<i32>} : memref<1x8x32xf32, #tpu.memory_space<vmem>>, vector<1x8x32xf32>,
    return
  }
  func.func @transform_0(%arg0: i32) -> (i32, i32, i32) {
    %c0_i32 = arith.constant 0 : i32
    %c0_i32_0 = arith.constant 0 : i32
    %c0_i32_1 = arith.constant 0 : i32
    return %arg0, %c0_i32, %c0_i32_0 : i32, i32, i32
  }
  func.func @transform_1(%arg0: i32) -> (i32, i32) {
    %c0_i32 = arith.constant 0 : i32
    %c0_i32_0 = arith.constant 0 : i32
    %c0_i32_1 = arith.constant 0 : i32
    return %c0_i32, %c0_i32_0 : i32, i32
  }
  func.func @transform_2(%arg0: i32) -> (i32, i32) {
    %c0_i32 = arith.constant 0 : i32
    %c0_i32_0 = arith.constant 0 : i32
    %c0_i32_1 = arith.constant 0 : i32
    return %c0_i32, %c0_i32_0 : i32, i32
  }
  func.func @transform_3(%arg0: i32) -> (i32, i32) {
    %c0_i32 = arith.constant 0 : i32
    %c0_i32_0 = arith.constant 0 : i32
    %c0_i32_1 = arith.constant 0 : i32
    return %c0_i32, %c0_i32_0 : i32, i32
  }
  func.func @transform_4(%arg0: i32) -> (i32, i32) {
    %c0_i32 = arith.constant 0 : i32
    %c0_i32_0 = arith.constant 0 : i32
    %c0_i32_1 = arith.constant 0 : i32
    return %c0_i32, %c0_i32_0 : i32, i32
  }
  func.func @transform_5(%arg0: i32) -> (i32, i32) {
    %c0_i32 = arith.constant 0 : i32
    %c0_i32_0 = arith.constant 0 : i32
    %c0_i32_1 = arith.constant 0 : i32
    return %c0_i32, %c0_i32_0 : i32, i32
  }
  func.func @transform_6(%arg0: i32) -> (i32, i32) {
    %c0_i32 = arith.constant 0 : i32
    %c0_i32_0 = arith.constant 0 : i32
    %c0_i32_1 = arith.constant 0 : i32
    return %c0_i32, %c0_i32_0 : i32, i32
  }
  func.func @transform_7(%arg0: i32) -> (i32, i32) {
    %c0_i32 = arith.constant 0 : i32
    %c0_i32_0 = arith.constant 0 : i32
    %c0_i32_1 = arith.constant 0 : i32
    return %c0_i32, %c0_i32_0 : i32, i32
  }
  func.func @transform_8(%arg0: i32) -> (i32, i32) {
    %c0_i32 = arith.constant 0 : i32
    %c0_i32_0 = arith.constant 0 : i32
    %c0_i32_1 = arith.constant 0 : i32
    return %c0_i32, %c0_i32_0 : i32, i32
  }
  func.func @transform_9(%arg0: i32) -> (i32, i32) {
    %c0_i32 = arith.constant 0 : i32
    %c0_i32_0 = arith.constant 0 : i32
    %c0_i32_1 = arith.constant 0 : i32
    return %c0_i32, %c0_i32_0 : i32, i32
  }
  func.func @transform_10(%arg0: i32) -> (i32, i32) {
    %c0_i32 = arith.constant 0 : i32
    %c0_i32_0 = arith.constant 0 : i32
    %c0_i32_1 = arith.constant 0 : i32
    return %c0_i32, %c0_i32_0 : i32, i32
  }
  func.func @transform_11(%arg0: i32) -> (i32, i32, i32) {
    %c0_i32 = arith.constant 0 : i32
    %c0_i32_0 = arith.constant 0 : i32
    %c0_i32_1 = arith.constant 0 : i32
    return %arg0, %c0_i32, %c0_i32_0 : i32, i32, i32
  }
}

</mosaic_0001>

<bundles_post_ra>
// kernel: tpu_custom_call.1
= control target key start
LH: loop header
LB: loop body
LE: loop exit
PB: predicated region body
PF: predicated region fallthrough
CT: control target
= control target key end

     0   :  { %s5292_s0 = inlined_call_operand.hbm [shape: f32[2,8,32], index: 0, kind: input, shape index: {}]   ;;  %s5293_s1 = inlined_call_operand.hbm [shape: f32[1,32], index: 1, kind: input, shape index: {}]   ;;  %s5294_s2 = inlined_call_operand.hbm [shape: f32[1,32], index: 2, kind: input, shape index: {}]   ;;  %s5295_s3 = inlined_call_operand.hbm [shape: f32[32,96], index: 3, kind: input, shape index: {}]   ;;  %s5296_s4 = inlined_call_operand.hbm [shape: f32[32,32], index: 4, kind: input, shape index: {}]   ;;  %s5297_s5 = inlined_call_operand.hbm [shape: f32[1,32], index: 5, kind: input, shape index: {}]   ;;  %s5298_s6 = inlined_call_operand.hbm [shape: f32[1,32], index: 6, kind: input, shape index: {}]   ;;  %s5299_s7 = inlined_call_operand.hbm [shape: f32[1,32], index: 7, kind: input, shape index: {}]   ;;  %s5300_s8 = inlined_call_operand.hbm [shape: f32[32,96], index: 8, kind: input, shape index: {}]   ;;  %s5301_s9 = inlined_call_operand.hbm [shape: f32[32,32], index: 9, kind: input, shape index: {}]   ;;  %s5302_s10 = inlined_call_operand.hbm [shape: f32[1,32], index: 10, kind: input, shape index: {}]   ;;  %s5303_s11 = inlined_call_operand.hbm [shape: f32[2,8,32], index: 11, kind: output, shape index: {}]  }
   0x1   :  { %5312 = sst [smem:[#allocation28_spill]] %s5293_s1 }
   0x2   :  { %5313 = sst [smem:[#allocation29_spill]] %s5295_s3 }
   0x3   :  { %5314 = sst [smem:[#allocation30_spill]] %s5297_s5 }
   0x4   :  { %5315 = sst [smem:[#allocation31_spill]] %s5303_s11 }
   0x5   :  { %16 = vsyncpa [#allocation3], 0 }
   0x6   :  { %18 = vsyncpa [#allocation3 + $0x1], 0 }
   0x7   :  { %19 = vsyncpa [#allocation6], 0 }
   0x8   :  { %20 = vsyncpa [#allocation9], 0 }
   0x9   :  { %21 = vsyncpa [#allocation12], 0 }
   0xa   :  { %22 = vsyncpa [#allocation15], 0 }
   0xb   :  { %23 = vsyncpa [#allocation18], 0 }
   0xc   :  { %24 = vsyncpa [#allocation4], 0 }
   0xd   :  { %26 = vsyncpa [#allocation4 + $0x1], 0  ;;  %s4528_s17 = smov 0   ;;  %s4530_s18 = smov 0  }
   0xe   :  { %s4532_s19 = smov 0   ;;  %s4534_s20 = smov 0  }
   0xf LB: > { %s4441_s21 = smov [#allocation5]   ;;  %s4549_s23 = sadd.s32 4294967295, %s4439_s20   ;;  %s4439_s20 = sphi %s4534_s20, %s5348_s20   ;;  %s4435_s19 = sphi %s4532_s19, %s5347_s19   ;;  %s4431_s18 = sphi %s4530_s18, %s5346_s18   ;;  %s4427_s17 = sphi %s4528_s17, %s5345_s17  }
  0x10   : > { %s312_s22 = sshll.u32 %s4441_s21, 4  ;;  %p3560_p0 = scmp.ge.s32.totalorder %s4439_s20, 1  ;;  %s4554_s22 = int_to_ptr.vmem [resolvable:$true] %s312_s22 }
  0x11   : > { %p5309_p1 = scmp.eq.s32.totalorder %s4549_s23, 0  ;;  %p299_p2 = scmp.lt.s32.totalorder %s4439_s20, 3 }
  0x12   : > { %s4442_s25 = smov [#allocation8]   ;;  %s4443_s28 = smov [#allocation11]  }
  0x13   : > { %p4556_p3 = pnand %p3560_p0, %p299_p2  ;;  %s333_s26 = sshll.u32 %s4442_s25, 4  ;;  %s4563_s26 = int_to_ptr.vmem [resolvable:$true] %s333_s26 }
  0x14   : > { %s360_s29 = sshll.u32 %s4443_s28, 4  ;;  %s5318_s1 = sld [smem:[#allocation28_spill]]  ;;  %s4571_s29 = int_to_ptr.vmem [resolvable:$true] %s360_s29 }
  0x15   : > { %s5316_s24 = scalar_select %p4556_p3, 1, 0 }
  0x16   : > { %p3890_p5 = pneg %p4556_p3 }
  0x18   : > { %p4567_p6 = pnand %p3890_p5, %p5309_p1 }
  0x1a   : > { %s4043_s13 = scalar_lea.hbm %s5318_s1, 16  ;;  %p4581_p8 = pneg %p4567_p6 }
  0x1b   : > { %p4044_p7 = scmp.ne.s32.totalorder %s5318_s1, %s4043_s13  ;;  %p4050_p11 = scmp.lt.u32.totalorder %s4043_s13, %s5318_s1 }
  0x1d   : > { %p4046_p9 = pnand %p4581_p8, %p4044_p7 }
  0x1f   : > { %p4047_p10 = pneg %p4046_p9 }
  0x21   : > { %p4052_p12 = pnand %p4050_p11, %p4047_p10 }
  0x23   : > { %4055 = shalt.err (!%p4052_p12)
}
  0x24   : > { %s4056_s28 = scalar_lea.vmem %s4554_s22, 16  ;;  %s4063_s30 = scalar_lea.vmem %s4554_s22, 32 }
  0x25   : > { %p4057_p13 = scmp.ne.s32.totalorder %s4554_s22, %s4056_s28  ;;  %p4064_p5 = scmp.lt.s32.totalorder %s4554_s22, %s4554_s22 }
  0x26   : > { %p4065_p7 = scmp.lt.s32.totalorder %s4063_s30, %s4056_s28 }
  0x27   : > { %p4059_p0 = pnand %p4057_p13, %p4581_p8 }
  0x28   : > { %p4066_p9 = por %p4065_p7, %p4064_p5 }
  0x29   : > { %p4060_p2 = pneg %p4059_p0 }
  0x2b   : > { %p4067_p4 = pnand %p4066_p9, %p4060_p2 }
  0x2d   : > { %4070 = shalt.err (!%p4067_p4)
}
  0x2e   : > { %3893 = dma.hbm_to_vmem [thread:$0]  (!%p4567_p6), %s5318_s1, 16, %s4554_s22, [#allocation6]  }
  0x2f   : > { %s5320_s3 = sld [smem:[#allocation29_spill]] }
  0x35   : > { %s4071_s21 = scalar_lea.hbm %s5320_s3, 512 }
  0x36   : > { %p4072_p10 = scmp.ne.s32.totalorder %s5320_s3, %s4071_s21  ;;  %p4078_p4 = scmp.lt.u32.totalorder %s4071_s21, %s5320_s3 }
  0x38   : > { %p4074_p11 = pnand %p4072_p10, %p4581_p8 }
  0x3a   : > { %p4075_p12 = pneg %p4074_p11 }
  0x3c   : > { %p4080_p13 = pnand %p4078_p4, %p4075_p12 }
  0x3e   : > { %4083 = shalt.err (!%p4080_p13)
}
  0x3f   : > { %s4084_s22 = scalar_lea.vmem %s4563_s26, 512  ;;  %p4092_p7 = scmp.lt.s32.totalorder %s4563_s26, %s4563_s26 }
  0x40   : > { %p4085_p0 = scmp.ne.s32.totalorder %s4563_s26, %s4084_s22  ;;  %p4093_p9 = scmp.lt.s32.totalorder %s4084_s22, %s4084_s22 }
  0x42   : > { %p4087_p2 = pnand %p4085_p0, %p4581_p8  ;;  %p4094_p10 = por %p4093_p9, %p4092_p7 }
  0x44   : > { %p4088_p5 = pneg %p4087_p2 }
  0x46   : > { %p4095_p11 = pnand %p4094_p10, %p4088_p5 }
  0x48   : > { %4098 = shalt.err (!%p4095_p11)
}
  0x49   : > { %s5305_s11 = smov 128   ;;  %s5307_s12 = smov 8  }
  0x4a   : > { %3899 = dma.hbm_to_vmem [thread:$0]  (!%p4567_p6), %s5320_s3, 512, %s4563_s26, [#allocation9], %s5305_s11, %s5305_s11, %s5307_s12  }
  0x4b   : > { %s5321_s5 = sld [smem:[#allocation30_spill]] }
  0x51   : > { %s4099_s25 = scalar_lea.hbm %s5321_s5, 16 }
  0x52   : > { %p4100_p12 = scmp.ne.s32.totalorder %s5321_s5, %s4099_s25  ;;  %p4106_p0 = scmp.lt.u32.totalorder %s4099_s25, %s5321_s5 }
  0x54   : > { %p4102_p4 = pnand %p4100_p12, %p4581_p8 }
  0x56   : > { %p4103_p13 = pneg %p4102_p4 }
  0x58   : > { %p4108_p2 = pnand %p4106_p0, %p4103_p13 }
  0x5a   : > { %4111 = shalt.err (!%p4108_p2)
}
  0x5b   : > { %s4112_s26 = scalar_lea.vmem %s4571_s29, 16  ;;  %s4119_s13 = scalar_lea.vmem %s4571_s29, 32 }
  0x5c   : > { %p4113_p5 = scmp.ne.s32.totalorder %s4571_s29, %s4112_s26  ;;  %p4120_p10 = scmp.lt.s32.totalorder %s4571_s29, %s4571_s29 }
  0x5d   : > { %p4121_p11 = scmp.lt.s32.totalorder %s4119_s13, %s4112_s26 }
  0x5e   : > { %p4115_p7 = pnand %p4113_p5, %p4581_p8 }
  0x5f   : > { %p4122_p12 = por %p4121_p11, %p4120_p10 }
  0x60   : > { %p4116_p9 = pneg %p4115_p7 }
  0x62   : > { %p4123_p4 = pnand %p4122_p12, %p4116_p9 }
  0x64   : > { %4126 = shalt.err (!%p4123_p4)
}
  0x65   : > { %3905 = dma.hbm_to_vmem [thread:$0]  (!%p4567_p6), %s5321_s5, 16, %s4571_s29, [#allocation12]  }
  0x66   : > { %s4446_s15 = smov [#allocation14]   ;;  %s4447_s25 = smov [#allocation17]  }
  0x67   : > { %s382_s21 = sshll.u32 %s4446_s15, 4  ;;  %s405_s28 = sshll.u32 %s4447_s25, 4  ;;  %s383_s21 = int_to_ptr.vmem [resolvable:$true] %s382_s21  ;;  %s406_s28 = int_to_ptr.vmem [resolvable:$true] %s405_s28 }
  0x68   : > { %s4127_s26 = scalar_lea.hbm %s5299_s7, 16 }
  0x69   : > { %p4128_p13 = scmp.ne.s32.totalorder %s5299_s7, %s4127_s26  ;;  %p4134_p5 = scmp.lt.u32.totalorder %s4127_s26, %s5299_s7 }
  0x6b   : > { %p4130_p0 = pnand %p4128_p13, %p4581_p8 }
  0x6d   : > { %p4131_p2 = pneg %p4130_p0 }
  0x6f   : > { %p4136_p7 = pnand %p4134_p5, %p4131_p2 }
  0x71   : > { %4139 = shalt.err (!%p4136_p7)
}
  0x72   : > { %s4140_s29 = scalar_lea.vmem %s383_s21, 16  ;;  %s4147_s14 = scalar_lea.vmem %s383_s21, 32 }
  0x73   : > { %p4141_p9 = scmp.ne.s32.totalorder %s383_s21, %s4140_s29  ;;  %p4148_p12 = scmp.lt.s32.totalorder %s383_s21, %s383_s21 }
  0x74   : > { %p4149_p4 = scmp.lt.s32.totalorder %s4147_s14, %s4140_s29 }
  0x75   : > { %p4143_p10 = pnand %p4141_p9, %p4581_p8 }
  0x76   : > { %p4150_p1 = por %p4149_p4, %p4148_p12 }
  0x77   : > { %p4144_p11 = pneg %p4143_p10 }
  0x79   : > { %p4151_p3 = pnand %p4150_p1, %p4144_p11 }
  0x7b   : > { %4154 = shalt.err (!%p4151_p3)
}
  0x7c   : > { %3911 = dma.hbm_to_vmem [thread:$0]  (!%p4567_p6), %s5299_s7, 16, %s383_s21, [#allocation15]  }
  0x7d   : > { %s4155_s30 = scalar_lea.hbm %s5301_s9, 512 }
  0x7e   : > { %p4156_p13 = scmp.ne.s32.totalorder %s5301_s9, %s4155_s30  ;;  %p4162_p3 = scmp.lt.u32.totalorder %s4155_s30, %s5301_s9 }
  0x80   : > { %p4158_p0 = pnand %p4156_p13, %p4581_p8 }
  0x82   : > { %p4159_p1 = pneg %p4158_p0 }
  0x84   : > { %p4164_p2 = pnand %p4162_p3, %p4159_p1 }
  0x86   : > { %4167 = shalt.err (!%p4164_p2)
}
  0x87   : > { %s4168_s29 = scalar_lea.vmem %s406_s28, 512  ;;  %p4176_p10 = scmp.lt.s32.totalorder %s406_s28, %s406_s28 }
  0x88   : > { %p4169_p5 = scmp.ne.s32.totalorder %s406_s28, %s4168_s29  ;;  %p4177_p11 = scmp.lt.s32.totalorder %s4168_s29, %s4168_s29 }
  0x8a   : > { %p4171_p7 = pnand %p4169_p5, %p4581_p8  ;;  %p4178_p12 = por %p4177_p11, %p4176_p10 }
  0x8c   : > { %p4172_p9 = pneg %p4171_p7 }
  0x8e   : > { %p4179_p4 = pnand %p4178_p12, %p4172_p9 }
  0x90   : > { %4182 = shalt.err (!%p4179_p4)
}
  0x91   : > { %s5322_s21 = smov 8   ;;  %s5323_s14 = smov 128  }
  0x92   : > { %3917 = dma.hbm_to_vmem [thread:$0]  (!%p4567_p6), %s5301_s9, 512, %s406_s28, [#allocation18], %s5323_s14, %s5323_s14, %s5322_s21  }
  0x93   : > { %s4448_s12 = smov [#allocation7]   ;;  %s4449_s30 = smov [#allocation10]  }
  0x94   : > { %s323_s25 = sshll.u32 %s4448_s12, 4  ;;  %s346_s22 = sshll.u32 %s4449_s30, 4  ;;  %s324_s25 = int_to_ptr.vmem [resolvable:$true] %s323_s25  ;;  %s347_s22 = int_to_ptr.vmem [resolvable:$true] %s346_s22 }
  0x95   : > { %s4183_s1 = scalar_lea.hbm %s5294_s2, 16 }
  0x96   : > { %p4184_p13 = scmp.ne.s32.totalorder %s5294_s2, %s4183_s1  ;;  %p4190_p3 = scmp.lt.u32.totalorder %s4183_s1, %s5294_s2 }
  0x98   : > { %p4186_p0 = pnand %p4184_p13, %p4581_p8 }
  0x9a   : > { %p4187_p1 = pneg %p4186_p0 }
  0x9c   : > { %p4192_p2 = pnand %p4190_p3, %p4187_p1 }
  0x9e   : > { %4195 = shalt.err (!%p4192_p2)
}
  0x9f   : > { %s4196_s28 = scalar_lea.vmem %s324_s25, 16  ;;  %s4203_s15 = scalar_lea.vmem %s324_s25, 32 }
  0xa0   : > { %p4197_p5 = scmp.ne.s32.totalorder %s324_s25, %s4196_s28  ;;  %p4204_p10 = scmp.lt.s32.totalorder %s324_s25, %s324_s25 }
  0xa1   : > { %p4205_p11 = scmp.lt.s32.totalorder %s4203_s15, %s4196_s28 }
  0xa2   : > { %p4199_p7 = pnand %p4197_p5, %p4581_p8 }
  0xa3   : > { %p4206_p12 = por %p4205_p11, %p4204_p10 }
  0xa4   : > { %p4200_p9 = pneg %p4199_p7 }
  0xa6   : > { %p4207_p4 = pnand %p4206_p12, %p4200_p9 }
  0xa8   : > { %4210 = shalt.err (!%p4207_p4)
}
  0xa9   : > { %3896 = dma.hbm_to_vmem [thread:$0]  (!%p4567_p6), %s5294_s2, 16, %s324_s25, [#allocation6]  }
  0xaa   : > { %s4211_s26 = scalar_lea.hbm %s5296_s4, 512 }
  0xab   : > { %p4212_p13 = scmp.ne.s32.totalorder %s5296_s4, %s4211_s26  ;;  %p4218_p3 = scmp.lt.u32.totalorder %s4211_s26, %s5296_s4 }
  0xad   : > { %p4214_p0 = pnand %p4212_p13, %p4581_p8 }
  0xaf   : > { %p4215_p1 = pneg %p4214_p0 }
  0xb1   : > { %p4220_p2 = pnand %p4218_p3, %p4215_p1 }
  0xb3   : > { %4223 = shalt.err (!%p4220_p2)
}
  0xb4   : > { %s4224_s28 = scalar_lea.vmem %s347_s22, 512  ;;  %p4232_p10 = scmp.lt.s32.totalorder %s347_s22, %s347_s22 }
  0xb5   : > { %p4225_p5 = scmp.ne.s32.totalorder %s347_s22, %s4224_s28  ;;  %p4233_p11 = scmp.lt.s32.totalorder %s4224_s28, %s4224_s28 }
  0xb7   : > { %p4227_p7 = pnand %p4225_p5, %p4581_p8  ;;  %p4234_p12 = por %p4233_p11, %p4232_p10 }
  0xb9   : > { %p4228_p9 = pneg %p4227_p7 }
  0xbb   : > { %p4235_p4 = pnand %p4234_p12, %p4228_p9 }
  0xbd   : > { %4238 = shalt.err (!%p4235_p4)
}
  0xbe   : > { %3902 = dma.hbm_to_vmem [thread:$0]  (!%p4567_p6), %s5296_s4, 512, %s347_s22, [#allocation9], %s5323_s14, %s5323_s14, %s5322_s21  }
  0xbf   : > { %s4450_s3 = smov [#allocation13]   ;;  %s4451_s5 = smov [#allocation16]  }
  0xc0   : > { %s371_s12 = sshll.u32 %s4450_s3, 4  ;;  %s392_s30 = sshll.u32 %s4451_s5, 4  ;;  %s372_s12 = int_to_ptr.vmem [resolvable:$true] %s371_s12  ;;  %s393_s30 = int_to_ptr.vmem [resolvable:$true] %s392_s30 }
  0xc1   : > { %s4239_s1 = scalar_lea.hbm %s5298_s6, 16 }
  0xc2   : > { %p4240_p13 = scmp.ne.s32.totalorder %s5298_s6, %s4239_s1  ;;  %p4246_p3 = scmp.lt.u32.totalorder %s4239_s1, %s5298_s6 }
  0xc4   : > { %p4242_p0 = pnand %p4240_p13, %p4581_p8 }
  0xc6   : > { %p4243_p1 = pneg %p4242_p0 }
  0xc8   : > { %p4248_p2 = pnand %p4246_p3, %p4243_p1 }
  0xca   : > { %4251 = shalt.err (!%p4248_p2)
}
  0xcb   : > { %s4252_s22 = scalar_lea.vmem %s372_s12, 16  ;;  %s4259_s15 = scalar_lea.vmem %s372_s12, 32 }
  0xcc   : > { %p4253_p5 = scmp.ne.s32.totalorder %s372_s12, %s4252_s22  ;;  %p4260_p10 = scmp.lt.s32.totalorder %s372_s12, %s372_s12 }
  0xcd   : > { %p4261_p11 = scmp.lt.s32.totalorder %s4259_s15, %s4252_s22 }
  0xce   : > { %p4255_p7 = pnand %p4253_p5, %p4581_p8 }
  0xcf   : > { %p4262_p12 = por %p4261_p11, %p4260_p10 }
  0xd0   : > { %p4256_p9 = pneg %p4255_p7 }
  0xd2   : > { %p4263_p4 = pnand %p4262_p12, %p4256_p9 }
  0xd4   : > { %4266 = shalt.err (!%p4263_p4)
}
  0xd5   : > { %3908 = dma.hbm_to_vmem [thread:$0]  (!%p4567_p6), %s5298_s6, 16, %s372_s12, [#allocation12]  }
  0xd6   : > { %s4267_s1 = scalar_lea.hbm %s5300_s8, 512 }
  0xd7   : > { %p4268_p13 = scmp.ne.s32.totalorder %s5300_s8, %s4267_s1  ;;  %p4274_p3 = scmp.lt.u32.totalorder %s4267_s1, %s5300_s8 }
  0xd9   : > { %p4270_p0 = pnand %p4268_p13, %p4581_p8 }
  0xdb   : > { %p4271_p1 = pneg %p4270_p0 }
  0xdd   : > { %p4276_p2 = pnand %p4274_p3, %p4271_p1 }
  0xdf   : > { %4279 = shalt.err (!%p4276_p2)
}
  0xe0   : > { %s4280_s22 = scalar_lea.vmem %s393_s30, 512  ;;  %p4288_p10 = scmp.lt.s32.totalorder %s393_s30, %s393_s30 }
  0xe1   : > { %p4281_p5 = scmp.ne.s32.totalorder %s393_s30, %s4280_s22  ;;  %p4289_p11 = scmp.lt.s32.totalorder %s4280_s22, %s4280_s22 }
  0xe3   : > { %p4283_p7 = pnand %p4281_p5, %p4581_p8  ;;  %p4290_p12 = por %p4289_p11, %p4288_p10 }
  0xe5   : > { %p4284_p9 = pneg %p4283_p7 }
  0xe7   : > { %p4291_p4 = pnand %p4290_p12, %p4284_p9 }
  0xe9   : > { %4294 = shalt.err (!%p4291_p4)
}
  0xea   : > { %3914 = dma.hbm_to_vmem [thread:$0]  (!%p4567_p6), %s5300_s8, 512, %s393_s30, [#allocation15], %s5323_s14, %s5323_s14, %s5322_s21  }
  0xeb   : > { %s4452_s3 = smov [#allocation19]   ;;  %s4295_s1 = scalar_lea.hbm %s5302_s10, 16 }
  0xec   : > { %s419_s5 = sshll.u32 %s4452_s3, 4  ;;  %p4296_p13 = scmp.ne.s32.totalorder %s5302_s10, %s4295_s1  ;;  %s420_s5 = int_to_ptr.vmem [resolvable:$true] %s419_s5 }
  0xed   : > { %p4302_p3 = scmp.lt.u32.totalorder %s4295_s1, %s5302_s10 }
  0xee   : > { %p4298_p0 = pnand %p4296_p13, %p4581_p8 }
  0xf0   : > { %p4299_p1 = pneg %p4298_p0 }
  0xf2   : > { %p4304_p2 = pnand %p4302_p3, %p4299_p1 }
  0xf4   : > { %4307 = shalt.err (!%p4304_p2)
}
  0xf5   : > { %s4308_s21 = scalar_lea.vmem %s420_s5, 16  ;;  %s4315_s14 = scalar_lea.vmem %s420_s5, 32 }
  0xf6   : > { %p4309_p5 = scmp.ne.s32.totalorder %s420_s5, %s4308_s21  ;;  %p4316_p10 = scmp.lt.s32.totalorder %s420_s5, %s420_s5 }
  0xf7   : > { %p4317_p11 = scmp.lt.s32.totalorder %s4315_s14, %s4308_s21 }
  0xf8   : > { %p4311_p7 = pnand %p4309_p5, %p4581_p8 }
  0xf9   : > { %p4318_p12 = por %p4317_p11, %p4316_p10 }
  0xfa   : > { %p4312_p9 = pneg %p4311_p7 }
  0xfc   : > { %p4319_p4 = pnand %p4318_p12, %p4312_p9 }
  0xfe   : > { %4322 = shalt.err (!%p4319_p4)
}
  0xff   : > { %3920 = dma.hbm_to_vmem [thread:$0]  (!%p4567_p6), %s5302_s10, 16, %s420_s5, [#allocation18]  }
 0x100   : > { %s3559_s16 = sadd.s32 4294967294, %s4439_s20   ;;  %s4790_s27 = sadd.s32 1, %s4439_s20  }
 0x101   : > { %s36_s12 = ssub.s32 %s4439_s20, %s4790_s27  ;;  %s39_s15 = sadd.s32 1, %s4435_s19 }
 0x102   : > { %p37_p8 = scmp.eq.s32.totalorder %s36_s12, 0  ;;  %p46_p13 = scmp.ne.s32.totalorder %s4435_s19, %s4431_s18 }
 0x103   : > { %p47_p0 = scmp.eq.s32.totalorder %s4439_s20, 0  ;;  %p52_p1 = scmp.ne.s32.totalorder %s4431_s18, %s4427_s17 }
 0x104   : > { %s4801_s3 = scalar_select %p37_p8, %s4435_s19, %s39_s15  }
 0x105   : > { %p4803_p3 = por %p47_p0, %p46_p13  ;;  %p5325_p2 = scmp.eq.s32.totalorder %s4549_s23, 0 }
 0x106   : > { %p286_p5 = scmp.eq.s32.totalorder %s4549_s23, 1  ;;  %p292_p7 = scmp.eq.s32.totalorder %s3559_s16, 1 }
 0x107   : > { %p4809_p6 = por %p5325_p2, %p52_p1  ;;  %p3939_p9 = scmp.lt.s32.totalorder %s4439_s20, 2 }
 0x108   : > { %s430_s13 = sand.u32 1, %s4435_s19   ;;  %p4816_p10 = por %p286_p5, %p46_p13 }
 0x109   : > { %p4820_p11 = por %p292_p7, %p52_p1  ;;  %s3572_s11 = sshll.u32 %s430_s13, 3 }
 0x10a   : > { %s5327_s1 = scalar_select %p4816_p10, 1, 0 }
 0x10b   : > { %s5328_s29 = scalar_select %p4820_p11, 1, 0 }
 0x10c   : > { %s3573_s28 = sshll.u32 %s4439_s20, 7  ;;  %s434_s30 = scalar_lea.vmem [#allocation2], %s3572_s11 }
 0x10d   : > { %s4828_s14 = scalar_lea.hbm %s5292_s0, %s3573_s28  ;;  %s441_s22 = sshll.u32 %s434_s30, 4  ;;  %s4830_s22 = int_to_ptr.vmem [resolvable:$true] %s441_s22 }
 0x10e   : > { %p4834_p12 = pnand %p3939_p9, %p4803_p3  ;;  %s431_s12 = scalar_lea.sflag [#allocation3], %s430_s13 }
 0x10f   : > { %s4323_s15 = scalar_lea.hbm %s4828_s14, 128  ;;  %s4328_s25 = scalar_lea.hbm %s5292_s0, 256 }
 0x110   : > { %p4324_p4 = scmp.ne.s32.totalorder %s4828_s14, %s4323_s15  ;;  %p4325_p8 = pneg %p4834_p12 }
 0x111   : > { %p4329_p1 = scmp.lt.u32.totalorder %s4828_s14, %s5292_s0  ;;  %p4330_p3 = scmp.lt.u32.totalorder %s4328_s25, %s4323_s15 }
 0x112   : > { %p4326_p13 = pnand %p4325_p8, %p4324_p4  ;;  %p4332_p5 = scmp.lt.u32.totalorder %s4323_s15, %s4828_s14 }
 0x113   : > { %p4331_p2 = por %p4330_p3, %p4329_p1 }
 0x114   : > { %p4327_p0 = pneg %p4326_p13 }
 0x115   : > { %p4333_p7 = por %p4332_p5, %p4331_p2 }
 0x117   : > { %p4334_p9 = pnand %p4333_p7, %p4327_p0 }
 0x119   : > { %4337 = shalt.err (!%p4334_p9)
}
 0x11a   : > { %s4338_s13 = scalar_lea.vmem %s4830_s22, 128  ;;  %s4453_s30 = smov [#allocation2]  }
 0x11b   : > { %p4339_p4 = scmp.ne.s32.totalorder %s4830_s22, %s4338_s13  ;;  %s4343_s11 = sshll.u32 %s4453_s30, 4  ;;  %s4344_s11 = int_to_ptr.vmem [resolvable:$false] %s4343_s11 }
 0x11c   : > { %s4345_s28 = scalar_lea.vmem %s4344_s11, 256  ;;  %p4346_p10 = scmp.lt.s32.totalorder %s4830_s22, %s4344_s11 }
 0x11d   : > { %p4341_p13 = pnand %p4339_p4, %p4325_p8  ;;  %p4347_p1 = scmp.lt.s32.totalorder %s4345_s28, %s4338_s13 }
 0x11f   : > { %p4342_p11 = pneg %p4341_p13  ;;  %p4348_p3 = por %p4347_p1, %p4346_p10 }
 0x121   : > { %p4349_p2 = pnand %p4348_p3, %p4342_p11 }
 0x123   : > { %4352 = shalt.err (!%p4349_p2)
}
 0x124   : > { %3924 = dma.hbm_to_vmem [thread:$0]  (!%p4834_p12), %s4828_s14, 128, %s4830_s22, %s431_s12  }
 0x125   : > { %p5330_p0 = scmp.ne.s32.totalorder %s5316_s24, 0 }
 0x126   : > { %s4866_s15 = sand.u32 (!%p5330_p0), 1, %s4431_s18  }
 0x127   : > { %450 = sbr.rel (%p5330_p0) target bundleno = 2802 (0xaf2), region = 64  ;;  %s3575_s25 = sshll.u32 (!%p5330_p0), %s4866_s15, 3 }
 0x128   : > { %s453_s26 = scalar_lea.sflag (!%p5330_p0), [#allocation3], %s4866_s15  ;;  %s4872_s21 = scalar_lea.vmem (!%p5330_p0), [#allocation2], %s3575_s25 }
 0x12e   : > { %4398 = dma.done.wait (%p4809_p6), %s453_s26, 128  }
 0x12f   : > { %4400 = vsyncadd (%p4809_p6), %s453_s26, 4294967168  ;;  %p5331_p10 = scmp.eq.s32.totalorder %s4549_s23, 0 }
 0x131   : > { %4402 = dma.done.wait (%p5331_p10), [#allocation6], 32   ;;  %p5332_p11 = pmov %p5331_p10 }
 0x132   : > { %p5333_p12 = pmov %p5331_p10 }
 0x133   : > { %4404 = vsyncadd (%p5332_p11), [#allocation6], 4294967264 }
 0x134   : > { %4406 = dma.done.wait (%p5333_p12), [#allocation9], 1024   ;;  %p5334_p8 = pmov %p5331_p10 }
 0x136   : > { %4408 = vsyncadd (%p5334_p8), [#allocation9], 4294966272  ;;  %p5335_p5 = pmov %p5334_p8 }
 0x138   : > { %4410 = dma.done.wait (%p5335_p5), [#allocation12], 32   ;;  %p5336_p7 = pmov %p5335_p5 }
 0x139   : > { %p5337_p6 = pmov %p5335_p5 }
 0x13a   : > { %4412 = vsyncadd (%p5336_p7), [#allocation12], 4294967264 }
 0x13b   : > { %4414 = dma.done.wait (%p5337_p6), [#allocation15], 528   ;;  %p5338_p9 = pmov %p5335_p5 }
 0x13c   : > { %p5339_p4 = pmov %p5335_p5 }
 0x13d   : > { %4416 = vsyncadd (%p5338_p9), [#allocation15], 4294966768 }
 0x13e   : > { %4418 = dma.done.wait (%p5339_p4), [#allocation18], 528   ;;  %p5340_p13 = pmov %p5339_p4 }
 0x13f   : > { %vm538_vm0 = vcmask 261120   ;;  %v535_v0 = vld [vmem:[%s4872_s21] sm:$0xff]  ;;  %v570_v4 = vld [vmem:[#allocation8] sm:$0xff]  ;;  %v4454_v7 = vmov 0.0|0.0   ;;  %vm4455_vm1 = vmmov 0   ;;  %v4456_v10 = vmov 0.0  }
 0x140   : > { %4420 = vsyncadd (%p5340_p13), [#allocation18], 4294966768  ;;  %v539_v1 = vsel %vm538_vm0, %v535_v0, 0.0  ;;  %v544_v2 = vmul.f32 %v535_v0, %v535_v0  ;;  %v571_v5 = vld [vmem:[#allocation8 + $0x8] sm:$0xff]  ;;  %v572_v6 = vld [vmem:[#allocation8 + $0x10] sm:$0xff]  ;;  %3817 = vmatprep.subr.bf16.mxu0 %v4454_v7  ;;  %3701 = vmatprep.mubr.msk.f32.mxu0 %vm4455_vm1, %v4456_v10  ;;  %s4457_s24 = smov 104   ;;  %v662_v34 = vlaneseq }
 0x141   : > { %540 = vadd.xlane.f32.xlu0 %v539_v1  ;;  %v3818_v8 = vpack.c.bf16 %v571_v5, %v570_v4  ;;  %v573_v9 = vld [vmem:[#allocation8 + $0x18] sm:$0xff]  ;;  %3704 = vmatprep.subr.mxu1 %v4456_v10  ;;  %s4458_s5 = smov 120   ;;  %s4459_s14 = smov 112   ;;  %v4462_v32 = vmov 1983009808   ;;  %vm1089_vm2 = vcmask 64512  }
 0x142   : > { %v545_v3 = vsel %vm538_vm0, %v544_v2, 0.0  ;;  %3706 = vmatprep.mubr.msk.f32.mxu1 %vm4455_vm1, %v4456_v10  ;;  %v3821_v11 = vpack.c.bf16 %v573_v9, %v572_v6  ;;  %v3587_v22 = vld [vmem:[#allocation5] ss:$0 sm:$0xff]  ;;  %v3588_v24 = vld [vmem:[#allocation7] ss:$0 sm:$0xff]  ;;  %s4460_s22 = smov 96   ;;  %v660_v33 = vunpack.c.l.s4 %v4462_v32 }
 0x143   : > { %3819 = vmatpush3.bf16.msra.mxu0 %v3818_v8  ;;  %s4461_s16 = smov 64   ;;  %v663_v36 = vshrl.u32 %v662_v34, 7  ;;  %v4463_v37 = vmov 1934713408   ;;  %s4464_s12 = smov 8   ;;  %vm1879_vm3 = vcmask 130048  }
 0x144   : > { %3820 = vmatprep.subr.bf16.mxu0 %v4454_v7  ;;  %v661_v35 = vunpack.c.0.s8 %v660_v33  ;;  %v692_v38 = vunpack.c.l.s4 %v4463_v37  ;;  %s4465_s13 = smov 16   ;;  %s4466_s30 = smov 24   ;;  %vm1881_vm4 = vcmask 195584  }
 0x145   : > { %546 = vadd.xlane.f32.xlu0 %v545_v3  ;;  %s3638_s11 = sshll.u32 %s4549_s23, 7  ;;  %s534_s28 = scalar_lea.vmem [#allocation20], %s3575_s25 }
 0x146   : > { %v4934_v42 = vsub.s32 %v661_v35, %v663_v36  ;;  %v693_v45 = vunpack.c.0.s8 %v692_v38  ;;  %s3394_s26 = sshll.u32 %s534_s28, 4  ;;  %p5342_p3 = scmp.ne.s32.totalorder %s5327_s1, 0  ;;  %s5249_s26 = int_to_ptr.vmem [resolvable:$true] %s3394_s26 }
 0x147   : > { %3822 = vmatpush3.bf16.msra.mxu0 %v3821_v11  ;;  %s4353_s23 = scalar_lea.vmem %s5249_s26, 128  ;;  %s4467_s25 = smov [#allocation20]  }
 0x148   : > { %3724 = vmatprep.subr.mxu0 %v4456_v10  ;;  %v4944_v51 = vsub.s32 %v693_v45, %v663_v36  ;;  %p4354_p1 = scmp.ne.s32.totalorder %s5249_s26, %s4353_s23 }
 0x14a   : > { %p4355_p2 = pnand %p4354_p1, %p5342_p3 }
 0x14c   : > { %p4356_p0 = pneg %p4355_p2 }
 0x1ce   : > { %v541_v12 = vpop.xlane.xlu0 %540 }
 0x1cf   : > { %v543_v13 = vmul.f32 0.03125, %v541_v12 }
 0x1d1   : > { %v549_v15 = vmul.f32 %v543_v13, %v543_v13  ;;  %v552_v20 = vsub.f32 %v535_v0, %v543_v13 }
 0x1d2   : > { %v547_v14 = vpop.xlane.xlu0 %546 }
 0x1d3   : > { %v548_v16 = vmul.f32 0.03125, %v547_v14 }
 0x1d5   : > { %v550_v17 = vsub.f32 %v548_v16, %v549_v15 }
 0x1d7   : > { %v551_v18 = vmax.f32 %v550_v17, 0.0 }
 0x1d9   : > { %v553_v19 = vadd.f32 1e-05, %v551_v18 }
 0x1db   : > { %4008 = vrsqrt.f32 %v553_v19 }
 0x1e5   : > { %v4009_v21 = vpop.eup %4008 }
 0x1e6   : > { %v4909_v23 = vmul.f32 %v4009_v21, %v552_v20 }
 0x1e8   : > { %v562_v25 = vmul.f32 %v3587_v22, %v4909_v23 }
 0x1ea   : > { %v569_v26 = vadd.f32 %v3588_v24, %v562_v25 }
 0x1ec   : > { %3702 = vmatmul.mubr.msk.f32.vlgmr.msra.gmra.mrb[0].mxu0 %vm538_vm0, %v569_v26 }
 0x1ed   : > { %3726 = vmatprep.mubr.msk.f32.mxu0 %vm4455_vm1, %v4456_v10 }
 0x2bf   : > { %v643_v27 = vpop.f32.mrb[0].mxu0 }
 0x2c0   : > { %654 = vrot.lane.b32.xlu0 %v643_v27, %s4457_s24  ;;  %648 = vrot.lane.b32.xlu1 %v643_v27, %s4458_s5  ;;  %v3703_v28 = vpop.f32.mrb[1].mxu0 }
 0x2c4   : > { %651 = vrot.lane.b32.xlu1 %v643_v27, %s4459_s14 }
 0x2c8   : > { %793 = vrot.lane.b32.xlu1 %v643_v27, %s4460_s22 }
 0x332   : > { %v4919_v29 = vpop.permute.xlu1 %648  ;;  %v4927_v31 = vpop.permute.xlu0 %654 }
 0x333   : > { %795 = vrot.lane.b32.xlu1 %v4919_v29, %s4460_s22  ;;  %v673_v43 = vcombine.low %v4919_v29, %v4927_v31  ;;  %v674_v44 = vcombine.high %v4919_v29, %v4927_v31 }
 0x335   : > { %v681_v49 = vrot.slane %v673_v43, %v4934_v42  ;;  %v688_v50 = vrot.slane %v674_v44, %v4934_v42 }
 0x336   : > { %v4923_v30 = vpop.permute.xlu1 %651 }
 0x337   : > { %797 = vrot.lane.b32.xlu1 %v4923_v30, %s4460_s22  ;;  %v657_v39 = vcombine.low %v643_v27, %v4923_v30  ;;  %v658_v40 = vcombine.high %v643_v27, %v4923_v30 }
 0x339   : > { %v665_v46 = vrot.slane %v657_v39, %v4934_v42  ;;  %v672_v47 = vrot.slane %v658_v40, %v4934_v42 }
 0x33a   : > { %v794_v41 = vpop.permute.xlu1 %793 }
 0x33b   : > { %799 = vrot.lane.b32.xlu1 %v4927_v31, %s4460_s22  ;;  %v689_v52 = vcombine.low %v665_v46, %v681_v49  ;;  %v690_v53 = vcombine.high %v665_v46, %v681_v49  ;;  %v705_v54 = vcombine.low %v672_v47, %v688_v50  ;;  %v706_v55 = vcombine.high %v672_v47, %v688_v50 }
 0x33d   : > { %v697_v59 = vrot.slane %v689_v52, %v4944_v51  ;;  %v704_v60 = vrot.slane %v690_v53, %v4944_v51  ;;  %v713_v61 = vrot.slane %v705_v54, %v4944_v51  ;;  %v720_v62 = vrot.slane %v706_v55, %v4944_v51 }
 0x33f   : > { %941 = vrot.lane.b32.xlu1 %v643_v27, %s4461_s16  ;;  %v725_v6 = vcombine.low %v697_v59, %v704_v60  ;;  %v3590_v8 = vcombine.high %v697_v59, %v704_v60  ;;  %v741_v9 = vcombine.low %v713_v61, %v720_v62  ;;  %v3591_v11 = vcombine.high %v713_v61, %v720_v62 }
 0x341   : > { %v732_v20 = vrot.slane %v725_v6, %v4934_v42  ;;  %v740_v21 = vrot.slane %v3590_v8, %v4934_v42  ;;  %v748_v22 = vrot.slane %v741_v9, %v4934_v42  ;;  %v756_v24 = vrot.slane %v3591_v11, %v4934_v42 }
 0x343   : > { %v757_v36 = vcombine.low %v732_v20, %v740_v21  ;;  %v773_v37 = vcombine.low %v748_v22, %v756_v24  ;;  %v774_v49 = vcombine.high %v748_v22, %v756_v24 }
 0x345   : > { %v765_v43 = vrot.slane %v757_v36, %v4944_v51  ;;  %v781_v44 = vrot.slane %v773_v37, %v4944_v51 }
 0x347   : > { %v789_v50 = vcombine.low %v765_v43, %v781_v44  ;;  %v790_v55 = vcombine.high %v765_v43, %v781_v44 }
 0x3a5   : > { %v796_v48 = vpop.permute.xlu1 %795 }
 0x3a9   : > { %v798_v56 = vpop.permute.xlu1 %797 }
 0x3aa   : > { %v805_v57 = vcombine.low %v794_v41, %v798_v56  ;;  %v806_v58 = vcombine.high %v794_v41, %v798_v56 }
 0x3ac   : > { %v813_v2 = vrot.slane %v805_v57, %v4934_v42  ;;  %v820_v3 = vrot.slane %v806_v58, %v4934_v42  ;;  %v788_v57 = vrot.slane %v774_v49, %v4944_v51 }
 0x3ad   : > { %v800_v63 = vpop.permute.xlu1 %799 }
 0x3ae   : > { %v821_v0 = vcombine.low %v796_v48, %v800_v63  ;;  %v822_v1 = vcombine.high %v796_v48, %v800_v63  ;;  %v758_v48 = vcombine.high %v732_v20, %v740_v21 }
 0x3b0   : > { %v829_v4 = vrot.slane %v821_v0, %v4934_v42  ;;  %v836_v5 = vrot.slane %v822_v1, %v4934_v42  ;;  %v772_v56 = vrot.slane %v758_v48, %v4944_v51 }
 0x3b2   : > { %v837_v12 = vcombine.low %v813_v2, %v829_v4  ;;  %v838_v13 = vcombine.high %v813_v2, %v829_v4  ;;  %v853_v14 = vcombine.low %v820_v3, %v836_v5  ;;  %v854_v15 = vcombine.high %v820_v3, %v836_v5 }
 0x3b3   : > { %v791_v59 = vcombine.low %v772_v56, %v788_v57  ;;  %v792_v61 = vcombine.high %v772_v56, %v788_v57 }
 0x3b4   : > { %v845_v16 = vrot.slane %v837_v12, %v4944_v51  ;;  %v852_v17 = vrot.slane %v838_v13, %v4944_v51  ;;  %v861_v18 = vrot.slane %v853_v14, %v4944_v51  ;;  %v868_v19 = vrot.slane %v854_v15, %v4944_v51  ;;  %v942_v12 = vpop.permute.xlu1 %941 }
 0x3b6   : > { %v873_v25 = vcombine.low %v845_v16, %v852_v17  ;;  %v3592_v26 = vcombine.high %v845_v16, %v852_v17  ;;  %v889_v27 = vcombine.low %v861_v18, %v868_v19  ;;  %v3593_v28 = vcombine.high %v861_v18, %v868_v19 }
 0x3b8   : > { %v880_v32 = vrot.slane %v873_v25, %v4934_v42  ;;  %v888_v33 = vrot.slane %v3592_v26, %v4934_v42  ;;  %v896_v34 = vrot.slane %v889_v27, %v4934_v42  ;;  %v904_v35 = vrot.slane %v3593_v28, %v4934_v42 }
 0x3ba   : > { %v905_v38 = vcombine.low %v880_v32, %v888_v33  ;;  %v921_v39 = vcombine.low %v896_v34, %v904_v35  ;;  %v906_v45 = vcombine.high %v880_v32, %v888_v33  ;;  %v922_v46 = vcombine.high %v896_v34, %v904_v35 }
 0x3bc   : > { %v913_v40 = vrot.slane %v905_v38, %v4944_v51  ;;  %v929_v41 = vrot.slane %v921_v39, %v4944_v51  ;;  %v920_v53 = vrot.slane %v906_v45, %v4944_v51  ;;  %v936_v54 = vrot.slane %v922_v46, %v4944_v51 }
 0x3be   : > { %v937_v47 = vcombine.low %v913_v40, %v929_v41  ;;  %v938_v52 = vcombine.high %v913_v40, %v929_v41  ;;  %v939_v58 = vcombine.low %v920_v53, %v936_v54  ;;  %v940_v60 = vcombine.high %v920_v53, %v936_v54 }
 0x3c0   : > { %3705 = vmatpush3.xpose.msk.msra.mxu1 %vm1089_vm2, %v937_v47 }
 0x3c1   : > { %3709 = vmatprep.subr.mxu1 %v4456_v10 }
 0x3c3   : > { %3707 = vmatmul.mubr.msk.f32.vlgmr.msra.gmra.mrb[0].mxu1 %vm1089_vm2, %v789_v50 }
 0x3c4   : > { %3710 = vmatpush3.xpose.msk.msra.mxu1 %vm1089_vm2, %v938_v52  ;;  %3711 = vmatprep.mubr.msk.f32.mxu1 %vm4455_vm1, %v4456_v10 }
 0x3c5   : > { %3714 = vmatprep.subr.mxu1 %v4456_v10 }
 0x3c7   : > { %3712 = vmatmul.mubr.msk.f32.vlgmr.msra.gmra.mrb[2].mxu1 %vm1089_vm2, %v790_v55 }
 0x3c8   : > { %3715 = vmatpush3.xpose.msk.msra.mxu1 %vm1089_vm2, %v939_v58  ;;  %3716 = vmatprep.mubr.msk.f32.mxu1 %vm4455_vm1, %v4456_v10 }
 0x3c9   : > { %3719 = vmatprep.subr.mxu1 %v4456_v10 }
 0x3cb   : > { %3717 = vmatmul.mubr.msk.f32.vlgmr.msra.gmra.mrb[4].mxu1 %vm1089_vm2, %v791_v59 }
 0x3cc   : > { %3720 = vmatpush3.xpose.msk.msra.mxu1 %vm1089_vm2, %v940_v60  ;;  %3721 = vmatprep.mubr.msk.f32.mxu1 %vm4455_vm1, %v4456_v10  ;;  %v1984_v60 = vld [vmem:[#allocation16] sm:$0xff] }
 0x3cd   : > { %3729 = vmatprep.subr.mxu1 %v4456_v10 }
 0x3cf   : > { %3722 = vmatmul.mubr.msk.f32.vlgmr.msra.gmra.mrb[6].mxu1 %vm1089_vm2, %v792_v61  ;;  %v1985_v61 = vld [vmem:[#allocation16 + $0x8] sm:$0xff] }
 0x3d0   : > { %3731 = vmatprep.mubr.msk.f32.mxu1 %vm4455_vm1, %v4456_v10 }
 0x496   : > { %v4994_v62 = vpop.f32.mrb[0].mxu1 }
 0x497   : > { %v3708_v63 = vpop.f32.mrb[1].mxu1  ;;  %v1394_v11 = vsel %vm1089_vm2, %v4994_v62, -inf }
 0x49a   : > { %v1238_v0 = vpop.f32.mrb[2].mxu1 }
 0x49b   : > { %v3713_v1 = vpop.f32.mrb[3].mxu1  ;;  %v1397_v2 = vsel %vm1089_vm2, %v1238_v0, -inf }
 0x49c   : > { %1398 = vmax.xlane.f32.xlu1 %v1397_v2  ;;  %v1986_v2 = vld [vmem:[#allocation16 + $0x10] sm:$0xff] }
 0x49e   : > { %v4997_v3 = vpop.f32.mrb[4].mxu1 }
 0x49f   : > { %v3718_v4 = vpop.f32.mrb[5].mxu1  ;;  %v1400_v9 = vsel %vm1089_vm2, %v4997_v3, -inf }
 0x4a0   : > { %v1987_v4 = vld [vmem:[#allocation16 + $0x18] sm:$0xff] }
 0x4a2   : > { %v1390_v5 = vpop.f32.mrb[6].mxu1 }
 0x4a3   : > { %v3723_v6 = vpop.f32.mrb[7].mxu1  ;;  %v1403_v8 = vsel %vm1089_vm2, %v1390_v5, -inf }
 0x4a4   : > { %1404 = vmax.xlane.f32.xlu0 %v1403_v8  ;;  %v3833_v6 = vpack.c.bf16 %v1987_v4, %v1986_v2 }
 0x4ad   : > { %945 = vrot.lane.b32.xlu1 %v4923_v30, %s4461_s16 }
 0x4b1   : > { %947 = vrot.lane.b32.xlu1 %v4927_v31, %s4461_s16 }
 0x4ba   : > { %943 = vrot.lane.b32.xlu0 %v4919_v29, %s4461_s16 }
 0x4d5   : > { %1401 = vmax.xlane.f32.xlu1 %v1400_v9  ;;  %v3613_v9 = vld [vmem:[#allocation14] ss:$0 sm:$0xff] }
 0x4d9   : > { %1395 = vmax.xlane.f32.xlu0 %v1394_v11 }
 0x529   : > { %v1399_v13 = vpop.xlane.xlu1 %1398 }
 0x52a   : > { %v1407_v17 = vsub.f32 %v1238_v0, %v1399_v13  ;;  %v3830_v0 = vpack.c.bf16 %v1985_v61, %v1984_v60 }
 0x52c   : > { %v1412_v25 = vmul.f32 1.442695, %v1407_v17 }
 0x52d   : > { %v946_v14 = vpop.permute.xlu1 %945 }
 0x52e   : > { %v953_v16 = vcombine.low %v942_v12, %v946_v14  ;;  %v954_v30 = vcombine.high %v942_v12, %v946_v14  ;;  %4010 = vpow2.f32 %v1412_v25 }
 0x530   : > { %v961_v29 = vrot.slane %v953_v16, %v4934_v42  ;;  %v968_v21 = vrot.slane %v954_v30, %v4934_v42 }
 0x531   : > { %v1405_v15 = vpop.xlane.xlu0 %1404  ;;  %v948_v18 = vpop.permute.xlu1 %947 }
 0x532   : > { %v1409_v26 = vsub.f32 %v1390_v5, %v1405_v15  ;;  %v3612_v5 = vld [vmem:[#allocation13] ss:$0 sm:$0xff] }
 0x533   : > { %v1976_v8 = vmul.f32 %v3612_v5, %v4909_v23 }
 0x534   : > { %v1416_v38 = vmul.f32 1.442695, %v1409_v26 }
 0x535   : > { %v944_v31 = vpop.permute.xlu0 %943  ;;  %v1983_v11 = vadd.f32 %v3613_v9, %v1976_v8 }
 0x536   : > { %v969_v19 = vcombine.low %v944_v31, %v948_v18  ;;  %v970_v20 = vcombine.high %v944_v31, %v948_v18  ;;  %4012 = vpow2.f32 %v1416_v38 }
 0x538   : > { %v977_v22 = vrot.slane %v969_v19, %v4934_v42  ;;  %v984_v24 = vrot.slane %v970_v20, %v4934_v42  ;;  %v4011_v59 = vpop.eup %4010 }
 0x53a   : > { %v985_v27 = vcombine.low %v961_v29, %v977_v22  ;;  %v986_v28 = vcombine.high %v961_v29, %v977_v22  ;;  %v1001_v32 = vcombine.low %v968_v21, %v984_v24  ;;  %v1002_v33 = vcombine.high %v968_v21, %v984_v24 }
 0x53c   : > { %v993_v34 = vrot.slane %v985_v27, %v4944_v51  ;;  %v1000_v35 = vrot.slane %v986_v28, %v4944_v51  ;;  %v1009_v36 = vrot.slane %v1001_v32, %v4944_v51  ;;  %v1016_v37 = vrot.slane %v1002_v33, %v4944_v51 }
 0x53e   : > { %v1021_v39 = vcombine.low %v993_v34, %v1000_v35  ;;  %v3594_v40 = vcombine.high %v993_v34, %v1000_v35  ;;  %v1037_v41 = vcombine.low %v1009_v36, %v1016_v37  ;;  %v3595_v43 = vcombine.high %v1009_v36, %v1016_v37 }
 0x540   : > { %v1028_v44 = vrot.slane %v1021_v39, %v4934_v42  ;;  %v1036_v45 = vrot.slane %v3594_v40, %v4934_v42  ;;  %v1044_v46 = vrot.slane %v1037_v41, %v4934_v42  ;;  %v1052_v47 = vrot.slane %v3595_v43, %v4934_v42  ;;  %v4013_v1 = vpop.eup %4012 }
 0x542   : > { %v1053_v48 = vcombine.low %v1028_v44, %v1036_v45  ;;  %v1069_v49 = vcombine.low %v1044_v46, %v1052_v47  ;;  %v1054_v50 = vcombine.high %v1028_v44, %v1036_v45  ;;  %v1070_v52 = vcombine.high %v1044_v46, %v1052_v47 }
 0x544   : > { %v1061_v53 = vrot.slane %v1053_v48, %v4944_v51  ;;  %v1077_v54 = vrot.slane %v1069_v49, %v4944_v51  ;;  %v1068_v55 = vrot.slane %v1054_v50, %v4944_v51  ;;  %v1084_v56 = vrot.slane %v1070_v52, %v4944_v51 }
 0x546   : > { %v1085_v57 = vcombine.low %v1061_v53, %v1077_v54  ;;  %v1086_v58 = vcombine.high %v1061_v53, %v1077_v54  ;;  %v1088_v63 = vcombine.high %v1068_v55, %v1084_v56  ;;  %v1087_v31 = vcombine.low %v1068_v55, %v1084_v56 }
 0x548   : > { %3725 = vmatpush3.msra.mxu0 %v1085_v57  ;;  %3730 = vmatpush3.msra.mxu1 %v1086_v58 }
 0x549   : > { %3732 = vmatmul.mubr.msk.f32.vlgmr.msra.gmra.mrb[8].mxu1 %vm1089_vm2, %v4011_v59  ;;  %3739 = vmatprep.subr.mxu1 %v4456_v10 }
 0x54a   : > { %3740 = vmatpush3.msra.mxu1 %v1088_v63  ;;  %3741 = vmatprep.mubr.msk.f32.mxu1 %vm4455_vm1, %v4456_v10 }
 0x54b   : > { %3829 = vmatprep.subr.bf16.mxu1 %v4454_v7  ;;  %3734 = vmatprep.subr.mxu0 %v4456_v10 }
 0x54d   : > { %3742 = vmatmul.mubr.msk.f32.vlgmr.msra.gmra.mrb[10].mxu1 %vm1089_vm2, %v4013_v1 }
 0x54e   : > { %3831 = vmatpush3.bf16.msra.mxu1 %v3830_v0  ;;  %3763 = vmatprep.mubr.msk.f32.mxu1 %vm4455_vm1, %v4456_v10 }
 0x54f   : > { %3832 = vmatprep.subr.bf16.mxu1 %v4454_v7 }
 0x552   : > { %3834 = vmatpush3.bf16.msra.mxu1 %v3833_v6 }
 0x553   : > { %3771 = vmatprep.subr.mxu1 %v4456_v10 }
 0x555   : > { %3764 = vmatmul.mubr.msk.f32.vlgmr.msra.gmra.mrb[12].mxu1 %vm538_vm0, %v1983_v11 }
 0x556   : > { %3773 = vmatprep.mubr.msk.f32.mxu1 %vm4455_vm1, %v4456_v10 }
 0x562   : > { %v1402_v12 = vpop.xlane.xlu1 %1401 }
 0x563   : > { %v1408_v13 = vsub.f32 %v4997_v3, %v1402_v12  ;;  %v1427_v3 = vsel %vm1089_vm2, %v4013_v1, 0.0 }
 0x565   : > { %v1414_v14 = vmul.f32 1.442695, %v1408_v13 }
 0x566   : > { %v1396_v15 = vpop.xlane.xlu0 %1395 }
 0x567   : > { %4014 = vpow2.f32 %v1414_v14  ;;  %v1406_v23 = vsub.f32 %v4994_v62, %v1396_v15  ;;  %v1421_v62 = vsel %vm1089_vm2, %v4011_v59, 0.0 }
 0x569   : > { %v1410_v16 = vmul.f32 1.442695, %v1406_v23 }
 0x56b   : > { %4016 = vpow2.f32 %v1410_v16 }
 0x571   : > { %v4015_v30 = vpop.eup %4014 }
 0x572   : > { %v1424_v17 = vsel %vm1089_vm2, %v4015_v30, 0.0 }
 0x573   : > { %1425 = vadd.xlane.f32.xlu1 %v1424_v17 }
 0x575   : > { %v4017_v18 = vpop.eup %4016 }
 0x576   : > { %3727 = vmatmul.mubr.msk.f32.vlgmr.msra.gmra.mrb[2].mxu0 %vm1089_vm2, %v4017_v18  ;;  %v1418_v19 = vsel %vm1089_vm2, %v4017_v18, 0.0 }
 0x577   : > { %3735 = vmatpush3.msra.mxu0 %v1087_v31  ;;  %1419 = vadd.xlane.f32.xlu0 %v1418_v19 }
 0x578   : > { %3736 = vmatprep.mubr.msk.f32.mxu0 %vm4455_vm1, %v4456_v10  ;;  %3823 = vmatprep.subr.bf16.mxu0 %v4454_v7 }
 0x57a   : > { %3737 = vmatmul.mubr.msk.f32.vlgmr.msra.gmra.mrb[4].mxu0 %vm1089_vm2, %v4015_v30 }
 0x57b   : > { %1422 = vadd.xlane.f32.xlu0 %v1421_v62  ;;  %3752 = vmatprep.mubr.msk.f32.mxu0 %vm4455_vm1, %v4456_v10  ;;  %v1883_v62 = vld [vmem:[#allocation10] sm:$0xff] }
 0x57f   : > { %1428 = vadd.xlane.f32.xlu0 %v1427_v3  ;;  %v1884_v3 = vld [vmem:[#allocation10 + $0x8] sm:$0xff] }
 0x600   : > { %v1426_v38 = vpop.xlane.xlu1 %1425 }
 0x604   : > { %v1420_v20 = vpop.xlane.xlu0 %1419 }
 0x608   : > { %v1423_v29 = vpop.xlane.xlu0 %1422 }
 0x609   : > { %4018 = vrcp.f32 %v1423_v29  ;;  %v1885_v29 = vld [vmem:[#allocation10 + $0x10] sm:$0xff] }
 0x60c   : > { %v1429_v21 = vpop.xlane.xlu0 %1428 }
 0x60d   : > { %4020 = vrcp.f32 %v1429_v21  ;;  %v1886_v21 = vld [vmem:[#allocation10 + $0x18] sm:$0xff] }
 0x60e   : > { %4022 = vrcp.f32 %v1426_v38 }
 0x60f   : > { %4024 = vrcp.f32 %v1420_v20  ;;  %v3824_v20 = vpack.c.bf16 %v1884_v3, %v1883_v62 }
 0x611   : > { %3825 = vmatpush3.bf16.msra.mxu0 %v3824_v20 }
 0x612   : > { %3826 = vmatprep.subr.bf16.mxu0 %v4454_v7 }
 0x613   : > { %v4019_v25 = vpop.eup %4018 }
 0x617   : > { %v4021_v26 = vpop.eup %4020 }
 0x618   : > { %v4023_v41 = vpop.eup %4022 }
 0x619   : > { %v4025_v43 = vpop.eup %4024 }
 0x61c   : > { %v1572_v22 = vpop.f32.mrb[8].mxu1 }
 0x61d   : > { %v3733_v24 = vpop.f32.mrb[9].mxu1  ;;  %v1727_v28 = vmul.f32 %v4019_v25, %v1572_v22  ;;  %v3827_v22 = vpack.c.bf16 %v1886_v21, %v1885_v29 }
 0x61f   : > { %3828 = vmatpush3.bf16.msra.mxu0 %v3827_v22 }
 0x620   : > { %v1718_v27 = vpop.f32.mrb[10].mxu1  ;;  %3766 = vmatprep.subr.mxu0 %v4456_v10 }
 0x621   : > { %v1729_v32 = vmul.f32 %v4021_v26, %v1718_v27  ;;  %v3743_v33 = vpop.f32.mrb[11].mxu1 }
 0x623   : > { %v1746_v34 = vcombine.low %v1727_v28, %v1729_v32  ;;  %v1747_v35 = vcombine.high %v1727_v28, %v1729_v32 }
 0x625   : > { %v1754_v50 = vrot.slane %v1746_v34, %v4934_v42  ;;  %v1761_v52 = vrot.slane %v1747_v35, %v4934_v42 }
 0x628   : > { %v5054_v36 = vpop.f32.mrb[12].mxu1 }
 0x629   : > { %2065 = vrot.lane.b32.xlu0 %v5054_v36, %s4459_s14  ;;  %v3765_v37 = vpop.f32.mrb[13].mxu1  ;;  %2062 = vrot.lane.b32.xlu1 %v5054_v36, %s4458_s5  ;;  %s5341_s14 = sld [smem:[#allocation31_spill]] }
 0x62d   : > { %2068 = vrot.lane.b32.xlu1 %v5054_v36, %s4457_s24 }
 0x631   : > { %2207 = vrot.lane.b32.xlu1 %v5054_v36, %s4460_s22 }
 0x649   : > { %v1499_v39 = vpop.f32.mrb[2].mxu0 }
 0x64a   : > { %v3728_v40 = vpop.f32.mrb[3].mxu0  ;;  %v1726_v45 = vmul.f32 %v4025_v43, %v1499_v39 }
 0x64d   : > { %v1645_v44 = vpop.f32.mrb[4].mxu0 }
 0x64e   : > { %v1728_v46 = vmul.f32 %v4023_v41, %v1645_v44  ;;  %v3738_v47 = vpop.f32.mrb[5].mxu0 }
 0x650   : > { %v1730_v48 = vcombine.low %v1726_v45, %v1728_v46  ;;  %v1731_v49 = vcombine.high %v1726_v45, %v1728_v46 }
 0x652   : > { %v1738_v53 = vrot.slane %v1730_v48, %v4934_v42  ;;  %v1745_v54 = vrot.slane %v1731_v49, %v4934_v42 }
 0x654   : > { %v1762_v55 = vcombine.low %v1738_v53, %v1754_v50  ;;  %v1763_v56 = vcombine.high %v1738_v53, %v1754_v50  ;;  %v1778_v57 = vcombine.low %v1745_v54, %v1761_v52  ;;  %v1779_v58 = vcombine.high %v1745_v54, %v1761_v52 }
 0x656   : > { %v1770_v59 = vrot.slane %v1762_v55, %v4944_v51  ;;  %v1777_v60 = vrot.slane %v1763_v56, %v4944_v51  ;;  %v1786_v61 = vrot.slane %v1778_v57, %v4944_v51  ;;  %v1793_v63 = vrot.slane %v1779_v58, %v4944_v51 }
 0x658   : > { %v1798_v0 = vcombine.low %v1770_v59, %v1777_v60  ;;  %v3608_v1 = vcombine.high %v1770_v59, %v1777_v60  ;;  %v1814_v2 = vcombine.low %v1786_v61, %v1793_v63  ;;  %v3609_v4 = vcombine.high %v1786_v61, %v1793_v63 }
 0x65a   : > { %v1805_v5 = vrot.slane %v1798_v0, %v4934_v42  ;;  %v1813_v6 = vrot.slane %v3608_v1, %v4934_v42  ;;  %v1821_v8 = vrot.slane %v1814_v2, %v4934_v42  ;;  %v1829_v9 = vrot.slane %v3609_v4, %v4934_v42 }
 0x65c   : > { %v1830_v11 = vcombine.low %v1805_v5, %v1813_v6  ;;  %v1846_v12 = vcombine.low %v1821_v8, %v1829_v9  ;;  %v1831_v13 = vcombine.high %v1805_v5, %v1813_v6  ;;  %v1847_v14 = vcombine.high %v1821_v8, %v1829_v9 }
 0x65e   : > { %v5077_v15 = vrot.slane %v1830_v11, %v4944_v51  ;;  %v5080_v23 = vrot.slane %v1846_v12, %v4944_v51  ;;  %v1845_v16 = vrot.slane %v1831_v13, %v4944_v51  ;;  %v1861_v30 = vrot.slane %v1847_v14, %v4944_v51 }
 0x660   : > { %v1863_v17 = vcombine.high %v5077_v15, %v5080_v23  ;;  %v1864_v18 = vcombine.low %v1845_v16, %v1861_v30  ;;  %v1865_v31 = vcombine.high %v1845_v16, %v1861_v30  ;;  %v1862_v19 = vcombine.low %v5077_v15, %v5080_v23 }
 0x69b   : > { %v5090_v24 = vpop.permute.xlu0 %2065  ;;  %v5092_v25 = vpop.permute.xlu1 %2062 }
 0x69c   : > { %2211 = vrot.lane.b32.xlu1 %v5090_v24, %s4460_s22  ;;  %2209 = vrot.lane.b32.xlu0 %v5092_v25, %s4460_s22  ;;  %v2071_v28 = vcombine.low %v5054_v36, %v5090_v24  ;;  %v2072_v33 = vcombine.high %v5054_v36, %v5090_v24 }
 0x69e   : > { %v2079_v35 = vrot.slane %v2071_v28, %v4934_v42  ;;  %v2086_v39 = vrot.slane %v2072_v33, %v4934_v42 }
 0x69f   : > { %v5098_v26 = vpop.permute.xlu1 %2068 }
 0x6a0   : > { %2213 = vrot.lane.b32.xlu0 %v5098_v26, %s4460_s22  ;;  %1867 = vrot.lane.b32.xlu1 %v1863_v17, %s4464_s12  ;;  %v2087_v27 = vcombine.low %v5092_v25, %v5098_v26  ;;  %v2088_v32 = vcombine.high %v5092_v25, %v5098_v26  ;;  %s5247_s22 = scalar_lea.hbm %s5341_s14, %s3638_s11 }
 0x6a2   : > { %v2095_v34 = vrot.slane %v2087_v27, %v4934_v42  ;;  %v2102_v37 = vrot.slane %v2088_v32, %v4934_v42 }
 0x6a3   : > { %v2208_v38 = vpop.permute.xlu1 %2207 }
 0x6a4   : > { %1871 = vrot.lane.b32.xlu0 %v1864_v18, %s4465_s13  ;;  %1875 = vrot.lane.b32.xlu1 %v1865_v31, %s4466_s30  ;;  %v2103_v40 = vcombine.low %v2079_v35, %v2095_v34  ;;  %v2104_v41 = vcombine.high %v2079_v35, %v2095_v34  ;;  %v2119_v43 = vcombine.low %v2086_v39, %v2102_v37 }
 0x6a5   : > { %v2120_v44 = vcombine.high %v2086_v39, %v2102_v37 }
 0x6a6   : > { %v2111_v47 = vrot.slane %v2103_v40, %v4944_v51  ;;  %v2118_v48 = vrot.slane %v2104_v41, %v4944_v51  ;;  %v2127_v50 = vrot.slane %v2119_v43, %v4944_v51 }
 0x6a7   : > { %v2134_v52 = vrot.slane %v2120_v44, %v4944_v51 }
 0x6a8   : > { %2355 = vrot.lane.b32.xlu1 %v5054_v36, %s4461_s16  ;;  %v2139_v57 = vcombine.low %v2111_v47, %v2118_v48  ;;  %v3615_v63 = vcombine.high %v2111_v47, %v2118_v48 }
 0x6a9   : > { %v2155_v0 = vcombine.low %v2127_v50, %v2134_v52  ;;  %v3616_v1 = vcombine.high %v2127_v50, %v2134_v52 }
 0x6aa   : > { %v2146_v12 = vrot.slane %v2139_v57, %v4934_v42  ;;  %v2154_v30 = vrot.slane %v3615_v63, %v4934_v42 }
 0x6ab   : > { %v2162_v17 = vrot.slane %v2155_v0, %v4934_v42  ;;  %v2170_v18 = vrot.slane %v3616_v1, %v4934_v42 }
 0x6ac   : > { %v2171_v28 = vcombine.low %v2146_v12, %v2154_v30  ;;  %v2172_v40 = vcombine.high %v2146_v12, %v2154_v30 }
 0x6ad   : > { %v2187_v32 = vcombine.low %v2162_v17, %v2170_v18  ;;  %v2188_v44 = vcombine.high %v2162_v17, %v2170_v18 }
 0x6ae   : > { %v2179_v41 = vrot.slane %v2171_v28, %v4944_v51 }
 0x6af   : > { %v2195_v43 = vrot.slane %v2187_v32, %v4944_v51  ;;  %v2202_v52 = vrot.slane %v2188_v44, %v4944_v51 }
 0x6b1   : > { %v2204_v50 = vcombine.high %v2179_v41, %v2195_v43 }
 0x70e   : > { %v2210_v45 = vpop.permute.xlu0 %2209  ;;  %v2212_v46 = vpop.permute.xlu1 %2211 }
 0x70f   : > { %v2219_v36 = vcombine.low %v2208_v38, %v2212_v46  ;;  %v2220_v49 = vcombine.high %v2208_v38, %v2212_v46 }
 0x711   : > { %v2227_v58 = vrot.slane %v2219_v36, %v4934_v42  ;;  %v2234_v59 = vrot.slane %v2220_v49, %v4934_v42  ;;  %v2186_v36 = vrot.slane %v2172_v40, %v4944_v51  ;;  %v2203_v49 = vcombine.low %v2179_v41, %v2195_v43 }
 0x712   : > { %v2214_v53 = vpop.permute.xlu0 %2213  ;;  %v1868_v54 = vpop.permute.xlu1 %1867 }
 0x713   : > { %v2235_v55 = vcombine.low %v2210_v45, %v2214_v53  ;;  %v2236_v56 = vcombine.high %v2210_v45, %v2214_v53  ;;  %v1878_v2 = vsel %vm1089_vm2, %v1862_v19, %v1868_v54 }
 0x715   : > { %v2243_v60 = vrot.slane %v2235_v55, %v4934_v42  ;;  %v2250_v61 = vrot.slane %v2236_v56, %v4934_v42  ;;  %v2205_v55 = vcombine.low %v2186_v36, %v2202_v52  ;;  %v2206_v56 = vcombine.high %v2186_v36, %v2202_v52 }
 0x716   : > { %v1872_v4 = vpop.permute.xlu0 %1871  ;;  %v1876_v11 = vpop.permute.xlu1 %1875 }
 0x717   : > { %v2251_v5 = vcombine.low %v2227_v58, %v2243_v60  ;;  %v2252_v6 = vcombine.high %v2227_v58, %v2243_v60  ;;  %v2267_v8 = vcombine.low %v2234_v59, %v2250_v61  ;;  %v2268_v9 = vcombine.high %v2234_v59, %v2250_v61 }
 0x718   : > { %v1880_v13 = vsel %vm1879_vm3, %v1878_v2, %v1872_v4 }
 0x719   : > { %v2259_v14 = vrot.slane %v2251_v5, %v4944_v51  ;;  %v2266_v15 = vrot.slane %v2252_v6, %v4944_v51  ;;  %v2275_v23 = vrot.slane %v2267_v8, %v4944_v51  ;;  %v2282_v16 = vrot.slane %v2268_v9, %v4944_v51 }
 0x71a   : > { %v1882_v31 = vsel %vm1881_vm4, %v1880_v13, %v1876_v11  ;;  %v2356_v8 = vpop.permute.xlu1 %2355 }
 0x71b   : > { %v2287_v19 = vcombine.low %v2259_v14, %v2266_v15  ;;  %v3617_v62 = vcombine.high %v2259_v14, %v2266_v15  ;;  %v2303_v3 = vcombine.low %v2275_v23, %v2282_v16  ;;  %v3618_v20 = vcombine.high %v2275_v23, %v2282_v16  ;;  %3753 = vmatmul.mubr.msk.f32.vlgmr.msra.gmra.mrb[6].mxu0 %vm538_vm0, %v1882_v31 }
 0x71c   : > { %3768 = vmatprep.mubr.msk.f32.mxu0 %vm4455_vm1, %v4456_v10 }
 0x71d   : > { %v2294_v29 = vrot.slane %v2287_v19, %v4934_v42  ;;  %v2302_v21 = vrot.slane %v3617_v62, %v4934_v42  ;;  %v2310_v22 = vrot.slane %v2303_v3, %v4934_v42  ;;  %v2318_v27 = vrot.slane %v3618_v20, %v4934_v42 }
 0x71f   : > { %v2319_v33 = vcombine.low %v2294_v29, %v2302_v21  ;;  %v2320_v34 = vcombine.high %v2294_v29, %v2302_v21  ;;  %v2335_v35 = vcombine.low %v2310_v22, %v2318_v27  ;;  %v2336_v37 = vcombine.high %v2310_v22, %v2318_v27 }
 0x721   : > { %v2327_v38 = vrot.slane %v2319_v33, %v4944_v51  ;;  %v2343_v39 = vrot.slane %v2335_v35, %v4944_v51  ;;  %v2334_v47 = vrot.slane %v2320_v34, %v4944_v51  ;;  %v2350_v48 = vrot.slane %v2336_v37, %v4944_v51 }
 0x723   : > { %v2351_v45 = vcombine.low %v2327_v38, %v2343_v39  ;;  %v2352_v46 = vcombine.high %v2327_v38, %v2343_v39  ;;  %v2353_v53 = vcombine.low %v2334_v47, %v2350_v48  ;;  %v2354_v54 = vcombine.high %v2334_v47, %v2350_v48 }
 0x725   : > { %3767 = vmatpush3.xpose.msk.msra.mxu0 %vm1089_vm2, %v2351_v45  ;;  %3772 = vmatpush3.xpose.msk.msra.mxu1 %vm1089_vm2, %v2352_v46 }
 0x726   : > { %3776 = vmatprep.subr.mxu0 %v4456_v10  ;;  %3781 = vmatprep.subr.mxu1 %v4456_v10 }
 0x728   : > { %3769 = vmatmul.mubr.msk.f32.vlgmr.msra.gmra.mrb[8].mxu0 %vm1089_vm2, %v2203_v49  ;;  %3774 = vmatmul.mubr.msk.f32.vlgmr.msra.gmra.mrb[14].mxu1 %vm1089_vm2, %v2204_v50 }
 0x729   : > { %3777 = vmatpush3.xpose.msk.msra.mxu0 %vm1089_vm2, %v2353_v53  ;;  %3782 = vmatpush3.xpose.msk.msra.mxu1 %vm1089_vm2, %v2354_v54 }
 0x72a   : > { %3778 = vmatprep.mubr.msk.f32.mxu0 %vm4455_vm1, %v4456_v10  ;;  %3783 = vmatprep.mubr.msk.f32.mxu1 %vm4455_vm1, %v4456_v10 }
 0x72b   : > { %3786 = vmatprep.subr.mxu0 %v4456_v10  ;;  %3791 = vmatprep.subr.mxu1 %v4456_v10 }
 0x72c   : > { %3779 = vmatmul.mubr.msk.f32.vlgmr.msra.gmra.mrb[10].mxu0 %vm1089_vm2, %v2205_v55  ;;  %3784 = vmatmul.mubr.msk.f32.vlgmr.msra.gmra.mrb[16].mxu1 %vm1089_vm2, %v2206_v56 }
 0x72d   : > { %3788 = vmatprep.mubr.msk.f32.mxu0 %vm4455_vm1, %v4456_v10  ;;  %3793 = vmatprep.mubr.msk.f32.mxu1 %vm4455_vm1, %v4456_v10 }
 0x7fb   : > { %v2575_v57 = vpop.f32.mrb[8].mxu0  ;;  %v2651_v58 = vpop.f32.mrb[14].mxu1 }
 0x7fc   : > { %v3770_v59 = vpop.f32.mrb[9].mxu0  ;;  %v3775_v60 = vpop.f32.mrb[15].mxu1  ;;  %v2810_v61 = vsel %vm1089_vm2, %v2651_v58, -inf  ;;  %v2807_v63 = vsel %vm1089_vm2, %v2575_v57, -inf }
 0x7fd   : > { %2811 = vmax.xlane.f32.xlu1 %v2810_v61  ;;  %2808 = vmax.xlane.f32.xlu0 %v2807_v63 }
 0x7ff   : > { %v2727_v0 = vpop.f32.mrb[10].mxu0  ;;  %v2803_v1 = vpop.f32.mrb[16].mxu1 }
 0x800   : > { %v3780_v2 = vpop.f32.mrb[11].mxu0  ;;  %v3785_v4 = vpop.f32.mrb[17].mxu1  ;;  %v2813_v5 = vsel %vm1089_vm2, %v2727_v0, -inf  ;;  %v2816_v6 = vsel %vm1089_vm2, %v2803_v1, -inf }
 0x801   : > { %2814 = vmax.xlane.f32.xlu0 %v2813_v5 }
 0x805   : > { %2817 = vmax.xlane.f32.xlu0 %v2816_v6 }
 0x80e   : > { %2359 = vrot.lane.b32.xlu1 %v5090_v24, %s4461_s16 }
 0x812   : > { %2361 = vrot.lane.b32.xlu1 %v5098_v26, %s4461_s16 }
 0x81b   : > { %2357 = vrot.lane.b32.xlu0 %v5092_v25, %s4461_s16  ;;  %s4357_s16 = sshll.u32 %s4467_s25, 4  ;;  %s4358_s16 = int_to_ptr.vmem [resolvable:$false] %s4357_s16 }
 0x81c   : > { %p4360_p10 = scmp.lt.s32.totalorder %s5249_s26, %s4358_s16 }
 0x88a   : > { %v2812_v9 = vpop.xlane.xlu1 %2811  ;;  %v2809_v11 = vpop.xlane.xlu0 %2808 }
 0x88b   : > { %v2820_v12 = vsub.f32 %v2651_v58, %v2812_v9  ;;  %v2819_v13 = vsub.f32 %v2575_v57, %v2809_v11  ;;  %v3295_v9 = vld [vmem:[#allocation17 + $0x8] sm:$0xff] }
 0x88d   : > { %v2825_v14 = vmul.f32 1.442695, %v2820_v12  ;;  %v2823_v15 = vmul.f32 1.442695, %v2819_v13 }
 0x88e   : > { %v2815_v23 = vpop.xlane.xlu0 %2814  ;;  %v2360_v30 = vpop.permute.xlu1 %2359 }
 0x88f   : > { %4026 = vpow2.f32 %v2825_v14  ;;  %v2821_v16 = vsub.f32 %v2727_v0, %v2815_v23  ;;  %v2367_v26 = vcombine.low %v2356_v8, %v2360_v30  ;;  %v2368_v31 = vcombine.high %v2356_v8, %v2360_v30  ;;  %v3294_v8 = vld [vmem:[#allocation17] sm:$0xff] }
 0x890   : > { %4028 = vpow2.f32 %v2823_v15  ;;  %v3836_v11 = vpack.c.bf16 %v3295_v9, %v3294_v8 }
 0x891   : > { %v2827_v17 = vmul.f32 1.442695, %v2821_v16  ;;  %v2375_v21 = vrot.slane %v2367_v26, %v4934_v42  ;;  %v2382_v22 = vrot.slane %v2368_v31, %v4934_v42 }
 0x892   : > { %v2818_v24 = vpop.xlane.xlu0 %2817  ;;  %v2362_v25 = vpop.permute.xlu1 %2361 }
 0x893   : > { %4030 = vpow2.f32 %v2827_v17  ;;  %v2822_v18 = vsub.f32 %v2803_v1, %v2818_v24 }
 0x895   : > { %v2829_v19 = vmul.f32 1.442695, %v2822_v18 }
 0x896   : > { %v2358_v62 = vpop.permute.xlu0 %2357 }
 0x897   : > { %4032 = vpow2.f32 %v2829_v19  ;;  %v2383_v3 = vcombine.low %v2358_v62, %v2362_v25  ;;  %v2384_v20 = vcombine.high %v2358_v62, %v2362_v25 }
 0x899   : > { %v4027_v29 = vpop.eup %4026  ;;  %v2391_v27 = vrot.slane %v2383_v3, %v4934_v42  ;;  %v2398_v28 = vrot.slane %v2384_v20, %v4934_v42 }
 0x89a   : > { %v4029_v32 = vpop.eup %4028  ;;  %v2834_v33 = vsel %vm1089_vm2, %v4027_v29, 0.0 }
 0x89b   : > { %v2399_v34 = vcombine.low %v2375_v21, %v2391_v27  ;;  %v2400_v35 = vcombine.high %v2375_v21, %v2391_v27  ;;  %v2415_v37 = vcombine.low %v2382_v22, %v2398_v28  ;;  %v2416_v38 = vcombine.high %v2382_v22, %v2398_v28  ;;  %2835 = vadd.xlane.f32.xlu1 %v2834_v33 }
 0x89c   : > { %v2831_v39 = vsel %vm1089_vm2, %v4029_v32, 0.0 }
 0x89d   : > { %v4031_v40 = vpop.eup %4030  ;;  %v2407_v41 = vrot.slane %v2399_v34, %v4944_v51  ;;  %v2414_v43 = vrot.slane %v2400_v35, %v4944_v51  ;;  %v2423_v44 = vrot.slane %v2415_v37, %v4944_v51  ;;  %v2430_v45 = vrot.slane %v2416_v38, %v4944_v51  ;;  %2832 = vadd.xlane.f32.xlu0 %v2831_v39 }
 0x89e   : > { %v2837_v46 = vsel %vm1089_vm2, %v4031_v40, 0.0 }
 0x89f   : > { %v2435_v47 = vcombine.low %v2407_v41, %v2414_v43  ;;  %v3619_v48 = vcombine.high %v2407_v41, %v2414_v43  ;;  %v2451_v36 = vcombine.low %v2423_v44, %v2430_v45  ;;  %v3620_v49 = vcombine.high %v2423_v44, %v2430_v45  ;;  %v3296_v41 = vld [vmem:[#allocation17 + $0x10] sm:$0xff]  ;;  %v3297_v43 = vld [vmem:[#allocation17 + $0x18] sm:$0xff] }
 0x8a1   : > { %v4033_v50 = vpop.eup %4032  ;;  %v2442_v52 = vrot.slane %v2435_v47, %v4934_v42  ;;  %v2450_v53 = vrot.slane %v3619_v48, %v4934_v42  ;;  %v2458_v54 = vrot.slane %v2451_v36, %v4934_v42  ;;  %v2466_v55 = vrot.slane %v3620_v49, %v4934_v42  ;;  %2838 = vadd.xlane.f32.xlu0 %v2837_v46 }
 0x8a2   : > { %v2840_v56 = vsel %vm1089_vm2, %v4033_v50, 0.0  ;;  %v3839_v48 = vpack.c.bf16 %v3297_v43, %v3296_v41 }
 0x8a3   : > { %v2467_v57 = vcombine.low %v2442_v52, %v2450_v53  ;;  %v2483_v58 = vcombine.low %v2458_v54, %v2466_v55  ;;  %v2468_v59 = vcombine.high %v2442_v52, %v2450_v53  ;;  %v2484_v60 = vcombine.high %v2458_v54, %v2466_v55 }
 0x8a5   : > { %2841 = vadd.xlane.f32.xlu0 %v2840_v56  ;;  %v2475_v61 = vrot.slane %v2467_v57, %v4944_v51  ;;  %v2491_v63 = vrot.slane %v2483_v58, %v4944_v51  ;;  %v2482_v0 = vrot.slane %v2468_v59, %v4944_v51  ;;  %v2498_v1 = vrot.slane %v2484_v60, %v4944_v51 }
 0x8a7   : > { %v2499_v2 = vcombine.low %v2475_v61, %v2491_v63  ;;  %v2500_v4 = vcombine.high %v2475_v61, %v2491_v63  ;;  %v2501_v5 = vcombine.low %v2482_v0, %v2498_v1  ;;  %v2502_v6 = vcombine.high %v2482_v0, %v2498_v1 }
 0x8a9   : > { %3787 = vmatpush3.msra.mxu0 %v2499_v2  ;;  %3792 = vmatpush3.msra.mxu1 %v2500_v4 }
 0x8aa   : > { %3789 = vmatmul.mubr.msk.f32.vlgmr.msra.gmra.mrb[12].mxu0 %vm1089_vm2, %v4029_v32  ;;  %3794 = vmatmul.mubr.msk.f32.vlgmr.msra.gmra.mrb[18].mxu1 %vm1089_vm2, %v4027_v29 }
 0x8ab   : > { %3796 = vmatprep.subr.mxu0 %v4456_v10  ;;  %3801 = vmatprep.subr.mxu1 %v4456_v10 }
 0x8ac   : > { %3797 = vmatpush3.msra.mxu0 %v2501_v5  ;;  %3802 = vmatpush3.msra.mxu1 %v2502_v6 }
 0x8ad   : > { %3798 = vmatprep.mubr.msk.f32.mxu0 %vm4455_vm1, %v4456_v10  ;;  %3803 = vmatprep.mubr.msk.f32.mxu1 %vm4455_vm1, %v4456_v10 }
 0x8ae   : > { %3799 = vmatmul.mubr.msk.f32.vlgmr.msra.gmra.mrb[14].mxu0 %vm1089_vm2, %v4031_v40  ;;  %3804 = vmatmul.mubr.msk.f32.vlgmr.msra.gmra.mrb[20].mxu1 %vm1089_vm2, %v4033_v50 }
 0x8af   : > { %3835 = vmatprep.subr.bf16.mxu0 %v4454_v7  ;;  %3814 = vmatprep.mubr.msk.f32.mxu0 %vm4455_vm1, %v4456_v10 }
 0x8b0   : > { %3837 = vmatpush3.bf16.msra.mxu0 %v3836_v11 }
 0x8b1   : > { %3838 = vmatprep.subr.bf16.mxu0 %v4454_v7 }
 0x8b4   : > { %3840 = vmatpush3.bf16.msra.mxu0 %v3839_v48 }
 0x928   : > { %v2836_v14 = vpop.xlane.xlu1 %2835 }
 0x929   : > { %4034 = vrcp.f32 %v2836_v14  ;;  %v4042_v14 = vld [vmem:[%s4872_s21] sm:$0xff]  ;;  %s3381_s21 = scalar_lea.sflag [#allocation4], %s4866_s15 }
 0x92a   : > { %v2833_v12 = vpop.xlane.xlu0 %2832 }
 0x92b   : > { %4036 = vrcp.f32 %v2833_v12 }
 0x92e   : > { %v2839_v13 = vpop.xlane.xlu0 %2838 }
 0x92f   : > { %4038 = vrcp.f32 %v2839_v13  ;;  %v3610_v13 = vld [vmem:[#allocation11] ss:$0 sm:$0xff] }
 0x932   : > { %v2842_v15 = vpop.xlane.xlu0 %2841 }
 0x933   : > { %4040 = vrcp.f32 %v2842_v15  ;;  %v4035_v30 = vpop.eup %4034  ;;  %v3841_v15 = vadd.f32 %v4042_v14, %v3610_v13 }
 0x935   : > { %v4037_v10 = vpop.eup %4036 }
 0x939   : > { %v4039_v18 = vpop.eup %4038 }
 0x93d   : > { %v4041_v26 = vpop.eup %4040 }
 0x97d   : > { %v2912_v23 = vpop.f32.mrb[12].mxu0  ;;  %v2985_v16 = vpop.f32.mrb[18].mxu1 }
 0x97e   : > { %v3790_v17 = vpop.f32.mrb[13].mxu0  ;;  %v3795_v24 = vpop.f32.mrb[19].mxu1  ;;  %v3139_v25 = vmul.f32 %v4037_v10, %v2912_v23  ;;  %v3140_v7 = vmul.f32 %v4035_v30, %v2985_v16  ;;  %v3635_v23 = vld [vmem:[#allocation19] ss:$0 sm:$0xff] }
 0x97f   : > { %v3842_v16 = vadd.f32 %v3841_v15, %v3635_v23 }
 0x981   : > { %v3058_v31 = vpop.f32.mrb[14].mxu0  ;;  %v3131_v19 = vpop.f32.mrb[20].mxu1 }
 0x982   : > { %v3141_v62 = vmul.f32 %v4039_v18, %v3058_v31  ;;  %v3142_v3 = vmul.f32 %v4041_v26, %v3131_v19  ;;  %v3800_v20 = vpop.f32.mrb[15].mxu0  ;;  %v3805_v29 = vpop.f32.mrb[21].mxu1 }
 0x984   : > { %v3143_v21 = vcombine.low %v3139_v25, %v3141_v62  ;;  %v3144_v22 = vcombine.high %v3139_v25, %v3141_v62  ;;  %v3159_v27 = vcombine.low %v3140_v7, %v3142_v3  ;;  %v3160_v28 = vcombine.high %v3140_v7, %v3142_v3 }
 0x986   : > { %v3151_v32 = vrot.slane %v3143_v21, %v4934_v42  ;;  %v3158_v33 = vrot.slane %v3144_v22, %v4934_v42  ;;  %v3167_v34 = vrot.slane %v3159_v27, %v4934_v42  ;;  %v3174_v35 = vrot.slane %v3160_v28, %v4934_v42 }
 0x988   : > { %v3175_v37 = vcombine.low %v3151_v32, %v3167_v34  ;;  %v3176_v38 = vcombine.high %v3151_v32, %v3167_v34  ;;  %v3191_v39 = vcombine.low %v3158_v33, %v3174_v35  ;;  %v3192_v40 = vcombine.high %v3158_v33, %v3174_v35 }
 0x98a   : > { %v3183_v44 = vrot.slane %v3175_v37, %v4944_v51  ;;  %v3190_v45 = vrot.slane %v3176_v38, %v4944_v51  ;;  %v3199_v46 = vrot.slane %v3191_v39, %v4944_v51  ;;  %v3206_v47 = vrot.slane %v3192_v40, %v4944_v51 }
 0x98c   : > { %v3211_v36 = vcombine.low %v3183_v44, %v3190_v45  ;;  %v3633_v49 = vcombine.high %v3183_v44, %v3190_v45  ;;  %v3227_v50 = vcombine.low %v3199_v46, %v3206_v47  ;;  %v3634_v52 = vcombine.high %v3199_v46, %v3206_v47 }
 0x98e   : > { %v3218_v53 = vrot.slane %v3211_v36, %v4934_v42  ;;  %v3226_v54 = vrot.slane %v3633_v49, %v4934_v42  ;;  %v3234_v55 = vrot.slane %v3227_v50, %v4934_v42  ;;  %v3242_v56 = vrot.slane %v3634_v52, %v4934_v42 }
 0x990   : > { %v3244_v57 = vcombine.high %v3218_v53, %v3226_v54  ;;  %v3260_v58 = vcombine.high %v3234_v55, %v3242_v56  ;;  %v3243_v59 = vcombine.low %v3218_v53, %v3226_v54  ;;  %v3259_v60 = vcombine.low %v3234_v55, %v3242_v56 }
 0x992   : > { %v3258_v61 = vrot.slane %v3244_v57, %v4944_v51  ;;  %v3274_v63 = vrot.slane %v3260_v58, %v4944_v51  ;;  %v3251_v0 = vrot.slane %v3243_v59, %v4944_v51  ;;  %v3267_v1 = vrot.slane %v3259_v60, %v4944_v51 }
 0x994   : > { %v3277_v2 = vcombine.low %v3258_v61, %v3274_v63  ;;  %v3276_v4 = vcombine.high %v3251_v0, %v3267_v1  ;;  %v3278_v5 = vcombine.high %v3258_v61, %v3274_v63  ;;  %v3275_v6 = vcombine.low %v3251_v0, %v3267_v1 }
 0x996   : > { %3284 = vrot.lane.b32.xlu0 %v3277_v2, %s4465_s13  ;;  %3280 = vrot.lane.b32.xlu1 %v3276_v4, %s4464_s12  ;;  %s4359_s12 = scalar_lea.vmem %s4358_s16, 256 }
 0x997   : > { %p4361_p11 = scmp.lt.s32.totalorder %s4359_s12, %s4353_s23 }
 0x999   : > { %p4362_p12 = por %p4361_p11, %p4360_p10 }
 0x99a   : > { %3288 = vrot.lane.b32.xlu1 %v3278_v5, %s4466_s30 }
 0x99b   : > { %p4363_p8 = pnand %p4362_p12, %p4356_p0 }
 0xa08   : > { %v3281_v42 = vpop.permute.xlu1 %3280  ;;  %v3285_v8 = vpop.permute.xlu0 %3284 }
 0xa09   : > { %v3291_v9 = vsel %vm1089_vm2, %v3275_v6, %v3281_v42 }
 0xa0a   : > { %v3292_v51 = vsel %vm1879_vm3, %v3291_v9, %v3285_v8 }
 0xa0c   : > { %v3289_v11 = vpop.permute.xlu1 %3288 }
 0xa0d   : > { %v3293_v12 = vsel %vm1881_vm4, %v3292_v51, %v3289_v11 }
 0xa0e   : > { %3815 = vmatmul.mubr.msk.f32.vlgmr.msra.gmra.mrb[6].mxu0 %vm538_vm0, %v3293_v12 }
 0xae1   : > { %v3374_v30 = vpop.f32.mrb[6].mxu0 }
 0xae2   : > { %v3843_v17 = vadd.f32 %v3842_v16, %v3374_v30  ;;  %v3816_v24 = vpop.f32.mrb[7].mxu0 }
 0xae4   : > { %3379 = vst.msk [vmem:[%s534_s28] sm:$0xff] %vm538_vm0, %v3843_v17 }
 0xae5   : > { %4366 = shalt.err (!%p4363_p8)
}
 0xae6   : > { %s4367_s15 = scalar_lea.hbm %s5247_s22, 128  ;;  %s4371_s11 = scalar_lea.hbm %s5341_s14, 256 }
 0xae7   : > { %p4368_p5 = scmp.ne.s32.totalorder %s5247_s22, %s4367_s15  ;;  %p4372_p9 = scmp.lt.u32.totalorder %s5247_s22, %s5341_s14 }
 0xae8   : > { %p4373_p4 = scmp.lt.u32.totalorder %s4371_s11, %s4367_s15  ;;  %p4375_p1 = scmp.lt.u32.totalorder %s4367_s15, %s5247_s22 }
 0xae9   : > { %p4369_p7 = pnand %p4368_p5, %p5342_p3 }
 0xaea   : > { %p4374_p13 = por %p4373_p4, %p4372_p9 }
 0xaeb   : > { %p4370_p6 = pneg %p4369_p7 }
 0xaec   : > { %p4376_p2 = por %p4375_p1, %p4374_p13 }
 0xaee   : > { %p4377_p0 = pnand %p4376_p2, %p4370_p6 }
 0xaf0   : > { %4380 = shalt.err (!%p4377_p0)
}
 0xaf1   : > { %3888 = dma.vmem_to_hbm [thread:$0]  (%p5342_p3), %s5249_s26, 128, %s5247_s22, %s3381_s21  }
 0xaf2 PF: > { %s3406_s5 = sand.u32 1, %s4427_s17   ;;  %p5343_p10 = scmp.ne.s32.totalorder %s5328_s29, 0 }
 0xaf3   : > { %p5344_p11 = scmp.ge.s32.totalorder %s4439_s20, 2  ;;  %s3407_s23 = scalar_lea.sflag [#allocation4], %s3406_s5 }
 0xaf5   : > { %p3926_p12 = pnand %p5344_p11, %p5343_p10 }
 0xaf7   : > { %4422 = dma.done.wait (!%p3926_p12), %s3407_s23, 128  }
 0xaf8   : > { %4424 = vsyncadd (!%p3926_p12), %s3407_s23, 4294967168  ;;  %p29_p8 = scmp.ge.s32.totalorder %s4790_s27, 4   ;;  %s5345_s17 = smov %s4431_s18 }
 0xaf9   : > { %s5346_s18 = smov %s4435_s19  ;;  %s5347_s19 = smov %s4801_s3 }
 0xafa   : > { %s5348_s20 = smov %s4790_s27  ;;  %31 = sbr.rel (!%p29_p8) target bundleno = 15 (0xf), region = 149 }
 0xb01   :  { %3412 = vsyncpa [#allocation3], 1 }
 0xb02   :  { %3414 = vsyncpa [#allocation3 + $0x1], 1 }
 0xb03   :  { %3415 = vsyncpa [#allocation6], 1 }
 0xb04   :  { %3416 = vsyncpa [#allocation9], 1 }
 0xb05   :  { %3417 = vsyncpa [#allocation12], 1 }
 0xb06   :  { %3418 = vsyncpa [#allocation15], 1 }
 0xb07   :  { %3419 = vsyncpa [#allocation18], 1 }
 0xb08   :  { %3420 = vsyncpa [#allocation4], 1 }
 0xb09   :  { %3422 = vsyncpa [#allocation4 + $0x1], 1 }

</bundles_post_ra>
